<compile_context>
chip_gen: v7x
topology: tpu7x:2x2x1
jax: 0.10.0
libtpu: 0.0.40
codegen_flags: <defaults>
</compile_context>

<pallas_src>
import functools
import math

import jax
import jax.numpy as jnp
from jax.experimental import pallas as pl
from jax.experimental.pallas import tpu as pltpu  # noqa: F401  (kept per instructions)


def _round_up(x, m):
    return ((x + m - 1) // m) * m


# ------------------------------ fused kernel -------------------------------- #

def _fused_decoder_kernel(qv_ref, encf_ref, ench_ref, x_ref, hn_ref,
                          wih0_ref, whh0_ref, b0_ref,
                          wih1_ref, whh1_ref, b1_ref,
                          h_out_ref, c_out_ref, *, H, scale):
    """Dot attention + 2-layer single-step LSTM, fully resident in VMEM.

    qv   : (2, Bp, F)    query rows already in the ctx.view(2,B,H) row order
    encf : (2, Bp, T, F) enc_out rows matching qv rows (for the scores)
    ench : (2, Bp, T, H) the matching F-half of enc_out (for the context)
    x    : (Bp, IN)      dec_input
    hn   : (2, Bp, H)    previous hidden state (LSTM initial h per layer)
    wih* : (IN|H, GW) bf16,  whh* : (H, GW) bf16,  b* : (1, GW) f32
    h_out/c_out : (2, Bp, H) f32
    """
    # -------- attention: computed directly in the c_n = ctx.view(2,B,H) layout --------
    c_init = []
    for layer in range(2):                       # static 2-iteration unroll
        q = qv_ref[layer]                        # (Bp, F)
        ef = encf_ref[layer]                     # (Bp, T, F)
        eh = ench_ref[layer]                     # (Bp, T, H)
        s = jnp.sum(q[:, None, :] * ef, axis=-1) * scale        # (Bp, T)  VPU + lane reduce
        s = s - jnp.max(s, axis=-1, keepdims=True)
        p = jnp.exp(s)
        p = p * pl.reciprocal(jnp.sum(p, axis=-1, keepdims=True), approx=True)
        c_init.append(jnp.sum(p[:, :, None] * eh, axis=1))      # (Bp, H)  sublane reduce

    # -------- one LSTM cell: two accumulating bf16 matmuls, f32 gate math --------
    def cell(x, h, c_prev, wih_ref, whh_ref, b_ref):
        g = (jnp.dot(x.astype(jnp.bfloat16), wih_ref[...],
                     preferred_element_type=jnp.float32)
             + jnp.dot(h.astype(jnp.bfloat16), whh_ref[...],
                       preferred_element_type=jnp.float32)
             + b_ref[...])                                       # (Bp, GW) f32
        i = jax.nn.sigmoid(g[:, 0 * H:1 * H])
        f = jax.nn.sigmoid(g[:, 1 * H:2 * H])
        gg = jnp.tanh(g[:, 2 * H:3 * H])
        o = jax.nn.sigmoid(g[:, 3 * H:4 * H])
        c_new = f * c_prev + i * gg
        return o * jnp.tanh(c_new), c_new

    h0, c0 = cell(x_ref[...], hn_ref[0], c_init[0], wih0_ref, whh0_ref, b0_ref)
    h1, c1 = cell(h0, hn_ref[1], c_init[1], wih1_ref, whh1_ref, b1_ref)

    h_out_ref[0] = h0
    h_out_ref[1] = h1
    c_out_ref[0] = c0
    c_out_ref[1] = c1


# --------------------------------- wrapper ----------------------------------- #

def lstm_decoder_forward(params, dec_input, enc_out, dec_hids, *, hidden_size):
    """Mirrors lstmDecoder.forward with a single fused Pallas kernel."""
    B, T, F = enc_out.shape
    H = hidden_size
    assert F == 2 * H, "enc_out feature dim must be 2*hidden_size (h_n.view(B,1,F))"
    h_n, _ = dec_hids                                   # c part of dec_hids is unused (as in torch)

    Bp = _round_up(B, 8)                                # sublane-dense batch

    # s_n = h_n.view(B,1,F): row-major flatten of (2,B,H) -> (B,F)
    h_flat = jnp.reshape(h_n, (B, F))

    # Build the attention operands directly in the "viewed" row order j = layer*B + b
    # (matches c_n = ctx.view(2, B, H)).  Pure layout plumbing, done wrapper-side so
    # the kernel only does whole-tile, aligned ops.
    q_v = jnp.repeat(h_flat, 2, axis=0)                                   # (2B, F): row j -> h_flat[j//2]
    enc_fv = jnp.repeat(enc_out, 2, axis=0)                               # (2B, T, F)
    enc_hv = jnp.reshape(
        jnp.transpose(jnp.reshape(enc_out, (B, T, 2, H)), (0, 2, 1, 3)),
        (2 * B, T, H))                                                    # row j -> enc[j//2,:, (j%2)*H:(j%2+1)*H]

    def layer_major(a):   # (2B, ...) -> (2, Bp, ...), zero-padded batch rows
        a = jnp.reshape(a, (2, B) + a.shape[1:])
        pad = [(0, 0), (0, Bp - B)] + [(0, 0)] * (a.ndim - 2)
        return jnp.pad(a, pad)

    qv = layer_major(q_v)           # (2, Bp, F)
    encf = layer_major(enc_fv)      # (2, Bp, T, F)
    ench = layer_major(enc_hv)      # (2, Bp, T, H)

    x_p = jnp.pad(dec_input, ((0, Bp - B), (0, 0)))                       # (Bp, IN)
    hn_p = jnp.pad(h_n, ((0, 0), (0, Bp - B), (0, 0)))                    # (2, Bp, H)

    kernel = functools.partial(_fused_decoder_kernel, H=H,
                               scale=1.0 / math.sqrt(float(F)))

    h_out, c_out = pl.pallas_call(
        kernel,
        out_shape=(jax.ShapeDtypeStruct((2, Bp, H), jnp.float32),
                   jax.ShapeDtypeStruct((2, Bp, H), jnp.float32)),
        # no grid / BlockSpecs: single program, whole arrays resident in VMEM,
        # no pointless double-buffering of the weights.
    )(qv, encf, ench, x_p, hn_p,
      params['wih0'], params['whh0'], params['b0'],
      params['wih1'], params['whh1'], params['b1'])

    h_new = h_out[:, :B, :]
    c_new = c_out[:, :B, :]
    output = h_new[1]                                   # == output.squeeze(1)
    return output, (h_new, c_new)


# --------------------------- param init / packing ---------------------------- #

def xavier_normal(key, shape):
    fan_out, fan_in = shape
    std = math.sqrt(2.0 / (fan_in + fan_out))
    return std * jax.random.normal(key, shape, dtype=jnp.float32)


def init_params(key, input_size, hidden_size):
    """PyTorch-equivalent parameters (pre-transposed for x @ W^T)."""
    k0, k1, k2, k3 = jax.random.split(key, 4)
    H = hidden_size
    w_ih_l0 = xavier_normal(k0, (4 * H, input_size))
    w_hh_l0 = xavier_normal(k1, (4 * H, H))
    w_ih_l1 = xavier_normal(k2, (4 * H, H))
    w_hh_l1 = xavier_normal(k3, (4 * H, H))
    return dict(
        w_ih_l0_t=w_ih_l0.T, w_hh_l0_t=w_hh_l0.T, b_l0=jnp.zeros((1, 4 * H), jnp.float32),
        w_ih_l1_t=w_ih_l1.T, w_hh_l1_t=w_hh_l1.T, b_l1=jnp.zeros((1, 4 * H), jnp.float32),
    )


def pack_params(params, hidden_size):
    """Pad total gate width to a 128-lane multiple (NOT per-gate) and cast weights to bf16."""
    H = hidden_size
    GW = _round_up(4 * H, 128)

    def pad_gates(w):                                   # (rows, 4H) -> (rows, GW)
        return jnp.pad(w, ((0, 0), (0, GW - 4 * H)))

    return dict(
        wih0=pad_gates(params['w_ih_l0_t']).astype(jnp.bfloat16),
        whh0=pad_gates(params['w_hh_l0_t']).astype(jnp.bfloat16),
        b0=pad_gates(params['b_l0']),                   # biases stay f32
        wih1=pad_gates(params['w_ih_l1_t']).astype(jnp.bfloat16),
        whh1=pad_gates(params['w_hh_l1_t']).astype(jnp.bfloat16),
        b1=pad_gates(params['b_l1']),
    )


# ----------------------------- pure-JAX reference ---------------------------- #

def ref_forward(params, dec_input, enc_out, dec_hids, hidden_size):
    B, T, F = enc_out.shape
    h_n, _ = dec_hids
    h_flat = jnp.reshape(h_n, (B, F))
    scores = jnp.sum(h_flat[:, None, :] * enc_out, axis=-1) / math.sqrt(float(F))
    p = jax.nn.softmax(scores, axis=-1)
    ctx = jnp.sum(p[:, :, None] * enc_out, axis=1)
    c_n = jnp.reshape(ctx, (2, B, hidden_size))

    def cell(x, h, c, wih_t, whh_t, b):
        g = x @ wih_t + h @ whh_t + b
        i, f, gg, o = jnp.split(g, 4, axis=1)
        c_new = jax.nn.sigmoid(f) * c + jax.nn.sigmoid(i) * jnp.tanh(gg)
        return jax.nn.sigmoid(o) * jnp.tanh(c_new), c_new

    h0, c0 = cell(dec_input, h_n[0], c_n[0],
                  params['w_ih_l0_t'], params['w_hh_l0_t'], params['b_l0'])
    h1, c1 = cell(h0, h_n[1], c_n[1],
                  params['w_ih_l1_t'], params['w_hh_l1_t'], params['b_l1'])
    return h1, (jnp.stack([h0, h1]), jnp.stack([c0, c1]))


# ----------------------------------- main ------------------------------------ #

if __name__ == "__main__":
    B = 4            # batch
    H = 32           # hidden_size
    F = 2 * H        # enc_out feature dim (forced by h_n.view(B, 1, F))
    T = 8            # time (seq len of enc_out)
    IN = 64          # LSTM input size (constructor arg `enc_out`)

    key = jax.random.PRNGKey(0)
    kp, kx, ke, kh, kc = jax.random.split(key, 5)

    raw_params = init_params(kp, IN, H)
    packed = pack_params(raw_params, H)

    dec_input = jax.random.normal(kx, (B, IN), dtype=jnp.float32)
    enc_out = jax.random.normal(ke, (B, T, F), dtype=jnp.float32)
    h_n = jax.random.normal(kh, (2, B, H), dtype=jnp.float32)
    c_prev = jax.random.normal(kc, (2, B, H), dtype=jnp.float32)  # unused, like torch
    dec_hids = (h_n, c_prev)

    out, (h_new, c_new) = lstm_decoder_forward(packed, dec_input, enc_out, dec_hids,
                                               hidden_size=H)
    jax.block_until_ready((out, h_new, c_new))

    out_ref, (h_ref, c_ref) = ref_forward(raw_params, dec_input, enc_out, dec_hids, H)
    assert out.shape == (B, H) and h_new.shape == (2, B, H) and c_new.shape == (2, B, H)
    # bf16 matmul inputs -> relaxed tolerance vs. the f32 reference
    assert jnp.allclose(out, out_ref, rtol=2e-2, atol=2e-2)
    assert jnp.allclose(h_new, h_ref, rtol=2e-2, atol=2e-2)
    assert jnp.allclose(c_new, c_ref, rtol=2e-2, atol=2e-2)

    print("KERNEL_OK")
</pallas_src>

<mosaic_0001>
module attributes {stable_mosaic.version = 11 : i64} {
  func.func @_fused_decoder_kernel(%arg0: memref<2x8x64xf32, #tpu.memory_space<vmem>>, %arg1: memref<2x8x8x64xf32, #tpu.memory_space<vmem>>, %arg2: memref<2x8x8x32xf32, #tpu.memory_space<vmem>>, %arg3: memref<8x64xf32, #tpu.memory_space<vmem>>, %arg4: memref<2x8x32xf32, #tpu.memory_space<vmem>>, %arg5: memref<64x128xbf16, #tpu.memory_space<vmem>>, %arg6: memref<32x128xbf16, #tpu.memory_space<vmem>>, %arg7: memref<1x128xf32, #tpu.memory_space<vmem>>, %arg8: memref<32x128xbf16, #tpu.memory_space<vmem>>, %arg9: memref<32x128xbf16, #tpu.memory_space<vmem>>, %arg10: memref<1x128xf32, #tpu.memory_space<vmem>>, %arg11: memref<2x8x32xf32, #tpu.memory_space<vmem>>, %arg12: memref<2x8x32xf32, #tpu.memory_space<vmem>>) attributes {dimension_semantics = [], scalar_prefetch = 0 : i64, scratch_operands = 0 : i64, tpu.core_type = #tpu.core_type<tc>} {
    %c0 = arith.constant 0 : index
    %c0_0 = arith.constant 0 : index
    %c0_1 = arith.constant 0 : index
    %0 = vector.load %arg0[%c0, %c0_0, %c0_1] : memref<2x8x64xf32, #tpu.memory_space<vmem>>, vector<1x8x64xf32>
    %1 = vector.shape_cast %0 : vector<1x8x64xf32> to vector<8x64xf32>
    %c0_2 = arith.constant 0 : index
    %c0_3 = arith.constant 0 : index
    %c0_4 = arith.constant 0 : index
    %c0_5 = arith.constant 0 : index
    %2 = vector.load %arg1[%c0_2, %c0_3, %c0_4, %c0_5] : memref<2x8x8x64xf32, #tpu.memory_space<vmem>>, vector<1x8x8x64xf32>
    %3 = vector.shape_cast %2 : vector<1x8x8x64xf32> to vector<8x8x64xf32>
    %c0_6 = arith.constant 0 : index
    %c0_7 = arith.constant 0 : index
    %c0_8 = arith.constant 0 : index
    %c0_9 = arith.constant 0 : index
    %4 = vector.load %arg2[%c0_6, %c0_7, %c0_8, %c0_9] : memref<2x8x8x32xf32, #tpu.memory_space<vmem>>, vector<1x8x8x32xf32>
    %5 = vector.shape_cast %4 : vector<1x8x8x32xf32> to vector<8x8x32xf32>
    %6 = vector.shape_cast %1 : vector<8x64xf32> to vector<8x1x64xf32>
    %7 = vector.broadcast %6 : vector<8x1x64xf32> to vector<8x8x64xf32>
    %8 = arith.mulf %7, %3 : vector<8x8x64xf32>
    %cst = arith.constant dense<0.000000e+00> : vector<8x8xf32>
    %9 = vector.multi_reduction <add>, %8, %cst [2] : vector<8x8x64xf32> to vector<8x8xf32>
    %cst_10 = arith.constant 1.250000e-01 : f32
    %10 = vector.broadcast %cst_10 : f32 to vector<8x8xf32>
    %11 = arith.mulf %9, %10 : vector<8x8xf32>
    %cst_11 = arith.constant dense<0xFF800000> : vector<8xf32>
    %12 = vector.multi_reduction <maximumf>, %11, %cst_11 [1] : vector<8x8xf32> to vector<8xf32>
    %13 = vector.shape_cast %12 : vector<8xf32> to vector<8x1xf32>
    %14 = vector.broadcast %13 : vector<8x1xf32> to vector<8x8xf32>
    %15 = arith.subf %11, %14 : vector<8x8xf32>
    %16 = math.exp %15 : vector<8x8xf32>
    %cst_12 = arith.constant dense<0.000000e+00> : vector<8xf32>
    %17 = vector.multi_reduction <add>, %16, %cst_12 [1] : vector<8x8xf32> to vector<8xf32>
    %18 = vector.shape_cast %17 : vector<8xf32> to vector<8x1xf32>
    %19 = tpu.reciprocal %18 {approx = true} : vector<8x1xf32> -> vector<8x1xf32>
    %20 = vector.broadcast %19 : vector<8x1xf32> to vector<8x8xf32>
    %21 = arith.mulf %16, %20 : vector<8x8xf32>
    %22 = vector.shape_cast %21 : vector<8x8xf32> to vector<8x8x1xf32>
    %23 = vector.broadcast %22 : vector<8x8x1xf32> to vector<8x8x32xf32>
    %24 = arith.mulf %23, %5 : vector<8x8x32xf32>
    %cst_13 = arith.constant dense<0.000000e+00> : vector<8x32xf32>
    %25 = vector.multi_reduction <add>, %24, %cst_13 [1] : vector<8x8x32xf32> to vector<8x32xf32>
    %c1 = arith.constant 1 : index
    %c0_14 = arith.constant 0 : index
    %c0_15 = arith.constant 0 : index
    %26 = vector.load %arg0[%c1, %c0_14, %c0_15] : memref<2x8x64xf32, #tpu.memory_space<vmem>>, vector<1x8x64xf32>
    %27 = vector.shape_cast %26 : vector<1x8x64xf32> to vector<8x64xf32>
    %c1_16 = arith.constant 1 : index
    %c0_17 = arith.constant 0 : index
    %c0_18 = arith.constant 0 : index
    %c0_19 = arith.constant 0 : index
    %28 = vector.load %arg1[%c1_16, %c0_17, %c0_18, %c0_19] : memref<2x8x8x64xf32, #tpu.memory_space<vmem>>, vector<1x8x8x64xf32>
    %29 = vector.shape_cast %28 : vector<1x8x8x64xf32> to vector<8x8x64xf32>
    %c1_20 = arith.constant 1 : index
    %c0_21 = arith.constant 0 : index
    %c0_22 = arith.constant 0 : index
    %c0_23 = arith.constant 0 : index
    %30 = vector.load %arg2[%c1_20, %c0_21, %c0_22, %c0_23] : memref<2x8x8x32xf32, #tpu.memory_space<vmem>>, vector<1x8x8x32xf32>
    %31 = vector.shape_cast %30 : vector<1x8x8x32xf32> to vector<8x8x32xf32>
    %32 = vector.shape_cast %27 : vector<8x64xf32> to vector<8x1x64xf32>
    %33 = vector.broadcast %32 : vector<8x1x64xf32> to vector<8x8x64xf32>
    %34 = arith.mulf %33, %29 : vector<8x8x64xf32>
    %cst_24 = arith.constant dense<0.000000e+00> : vector<8x8xf32>
    %35 = vector.multi_reduction <add>, %34, %cst_24 [2] : vector<8x8x64xf32> to vector<8x8xf32>
    %cst_25 = arith.constant 1.250000e-01 : f32
    %36 = vector.broadcast %cst_25 : f32 to vector<8x8xf32>
    %37 = arith.mulf %35, %36 : vector<8x8xf32>
    %cst_26 = arith.constant dense<0xFF800000> : vector<8xf32>
    %38 = vector.multi_reduction <maximumf>, %37, %cst_26 [1] : vector<8x8xf32> to vector<8xf32>
    %39 = vector.shape_cast %38 : vector<8xf32> to vector<8x1xf32>
    %40 = vector.broadcast %39 : vector<8x1xf32> to vector<8x8xf32>
    %41 = arith.subf %37, %40 : vector<8x8xf32>
    %42 = math.exp %41 : vector<8x8xf32>
    %cst_27 = arith.constant dense<0.000000e+00> : vector<8xf32>
    %43 = vector.multi_reduction <add>, %42, %cst_27 [1] : vector<8x8xf32> to vector<8xf32>
    %44 = vector.shape_cast %43 : vector<8xf32> to vector<8x1xf32>
    %45 = tpu.reciprocal %44 {approx = true} : vector<8x1xf32> -> vector<8x1xf32>
    %46 = vector.broadcast %45 : vector<8x1xf32> to vector<8x8xf32>
    %47 = arith.mulf %42, %46 : vector<8x8xf32>
    %48 = vector.shape_cast %47 : vector<8x8xf32> to vector<8x8x1xf32>
    %49 = vector.broadcast %48 : vector<8x8x1xf32> to vector<8x8x32xf32>
    %50 = arith.mulf %49, %31 : vector<8x8x32xf32>
    %cst_28 = arith.constant dense<0.000000e+00> : vector<8x32xf32>
    %51 = vector.multi_reduction <add>, %50, %cst_28 [1] : vector<8x8x32xf32> to vector<8x32xf32>
    %c0_29 = arith.constant 0 : index
    %c0_30 = arith.constant 0 : index
    %52 = vector.load %arg3[%c0_29, %c0_30] : memref<8x64xf32, #tpu.memory_space<vmem>>, vector<8x64xf32>
    %c0_31 = arith.constant 0 : index
    %c0_32 = arith.constant 0 : index
    %c0_33 = arith.constant 0 : index
    %53 = vector.load %arg4[%c0_31, %c0_32, %c0_33] : memref<2x8x32xf32, #tpu.memory_space<vmem>>, vector<1x8x32xf32>
    %54 = vector.shape_cast %53 : vector<1x8x32xf32> to vector<8x32xf32>
    %55 = arith.truncf %52 : vector<8x64xf32> to vector<8x64xbf16>
    %c0_34 = arith.constant 0 : index
    %c0_35 = arith.constant 0 : index
    %56 = vector.load %arg5[%c0_34, %c0_35] : memref<64x128xbf16, #tpu.memory_space<vmem>>, vector<64x128xbf16>
    %cst_36 = arith.constant dense<0.000000e+00> : vector<8x128xf32>
    %57 = tpu.matmul %55, %56, %cst_36 {dimension_numbers = #tpu.dot_dimension_numbers<[1], [0], [0], [1], [0, 0, 1, 1], [], []>} : vector<8x64xbf16>, vector<64x128xbf16>, vector<8x128xf32> -> vector<8x128xf32>
    %58 = arith.truncf %54 : vector<8x32xf32> to vector<8x32xbf16>
    %c0_37 = arith.constant 0 : index
    %c0_38 = arith.constant 0 : index
    %59 = vector.load %arg6[%c0_37, %c0_38] : memref<32x128xbf16, #tpu.memory_space<vmem>>, vector<32x128xbf16>
    %cst_39 = arith.constant dense<0.000000e+00> : vector<8x128xf32>
    %60 = tpu.matmul %58, %59, %cst_39 {dimension_numbers = #tpu.dot_dimension_numbers<[1], [0], [0], [1], [0, 0, 1, 1], [], []>} : vector<8x32xbf16>, vector<32x128xbf16>, vector<8x128xf32> -> vector<8x128xf32>
    %61 = arith.addf %57, %60 : vector<8x128xf32>
    %c0_40 = arith.constant 0 : index
    %c0_41 = arith.constant 0 : index
    %62 = vector.load %arg7[%c0_40, %c0_41] : memref<1x128xf32, #tpu.memory_space<vmem>>, vector<1x128xf32>
    %63 = vector.broadcast %62 : vector<1x128xf32> to vector<8x128xf32>
    %64 = arith.addf %61, %63 : vector<8x128xf32>
    %65 = vector.extract_strided_slice %64 {offsets = [0, 0], sizes = [8, 32], strides = [1, 1]} : vector<8x128xf32> to vector<8x32xf32>
    %66 = arith.negf %65 : vector<8x32xf32>
    %67 = math.exp %66 : vector<8x32xf32>
    %cst_42 = arith.constant 1.000000e+00 : f32
    %68 = vector.broadcast %cst_42 : f32 to vector<8x32xf32>
    %69 = arith.addf %68, %67 : vector<8x32xf32>
    %70 = arith.divf %68, %69 : vector<8x32xf32>
    %71 = vector.extract_strided_slice %64 {offsets = [0, 32], sizes = [8, 32], strides = [1, 1]} : vector<8x128xf32> to vector<8x32xf32>
    %72 = arith.negf %71 : vector<8x32xf32>
    %73 = math.exp %72 : vector<8x32xf32>
    %cst_43 = arith.constant 1.000000e+00 : f32
    %74 = vector.broadcast %cst_43 : f32 to vector<8x32xf32>
    %75 = arith.addf %74, %73 : vector<8x32xf32>
    %76 = arith.divf %74, %75 : vector<8x32xf32>
    %77 = vector.extract_strided_slice %64 {offsets = [0, 64], sizes = [8, 32], strides = [1, 1]} : vector<8x128xf32> to vector<8x32xf32>
    %78 = math.tanh %77 : vector<8x32xf32>
    %79 = vector.extract_strided_slice %64 {offsets = [0, 96], sizes = [8, 32], strides = [1, 1]} : vector<8x128xf32> to vector<8x32xf32>
    %80 = arith.negf %79 : vector<8x32xf32>
    %81 = math.exp %80 : vector<8x32xf32>
    %cst_44 = arith.constant 1.000000e+00 : f32
    %82 = vector.broadcast %cst_44 : f32 to vector<8x32xf32>
    %83 = arith.addf %82, %81 : vector<8x32xf32>
    %84 = arith.divf %82, %83 : vector<8x32xf32>
    %85 = arith.mulf %76, %25 : vector<8x32xf32>
    %86 = arith.mulf %70, %78 : vector<8x32xf32>
    %87 = arith.addf %85, %86 : vector<8x32xf32>
    %88 = math.tanh %87 : vector<8x32xf32>
    %89 = arith.mulf %84, %88 : vector<8x32xf32>
    %c1_45 = arith.constant 1 : index
    %c0_46 = arith.constant 0 : index
    %c0_47 = arith.constant 0 : index
    %90 = vector.load %arg4[%c1_45, %c0_46, %c0_47] : memref<2x8x32xf32, #tpu.memory_space<vmem>>, vector<1x8x32xf32>
    %91 = vector.shape_cast %90 : vector<1x8x32xf32> to vector<8x32xf32>
    %92 = arith.truncf %89 : vector<8x32xf32> to vector<8x32xbf16>
    %c0_48 = arith.constant 0 : index
    %c0_49 = arith.constant 0 : index
    %93 = vector.load %arg8[%c0_48, %c0_49] : memref<32x128xbf16, #tpu.memory_space<vmem>>, vector<32x128xbf16>
    %cst_50 = arith.constant dense<0.000000e+00> : vector<8x128xf32>
    %94 = tpu.matmul %92, %93, %cst_50 {dimension_numbers = #tpu.dot_dimension_numbers<[1], [0], [0], [1], [0, 0, 1, 1], [], []>} : vector<8x32xbf16>, vector<32x128xbf16>, vector<8x128xf32> -> vector<8x128xf32>
    %95 = arith.truncf %91 : vector<8x32xf32> to vector<8x32xbf16>
    %c0_51 = arith.constant 0 : index
    %c0_52 = arith.constant 0 : index
    %96 = vector.load %arg9[%c0_51, %c0_52] : memref<32x128xbf16, #tpu.memory_space<vmem>>, vector<32x128xbf16>
    %cst_53 = arith.constant dense<0.000000e+00> : vector<8x128xf32>
    %97 = tpu.matmul %95, %96, %cst_53 {dimension_numbers = #tpu.dot_dimension_numbers<[1], [0], [0], [1], [0, 0, 1, 1], [], []>} : vector<8x32xbf16>, vector<32x128xbf16>, vector<8x128xf32> -> vector<8x128xf32>
    %98 = arith.addf %94, %97 : vector<8x128xf32>
    %c0_54 = arith.constant 0 : index
    %c0_55 = arith.constant 0 : index
    %99 = vector.load %arg10[%c0_54, %c0_55] : memref<1x128xf32, #tpu.memory_space<vmem>>, vector<1x128xf32>
    %100 = vector.broadcast %99 : vector<1x128xf32> to vector<8x128xf32>
    %101 = arith.addf %98, %100 : vector<8x128xf32>
    %102 = vector.extract_strided_slice %101 {offsets = [0, 0], sizes = [8, 32], strides = [1, 1]} : vector<8x128xf32> to vector<8x32xf32>
    %103 = arith.negf %102 : vector<8x32xf32>
    %104 = math.exp %103 : vector<8x32xf32>
    %cst_56 = arith.constant 1.000000e+00 : f32
    %105 = vector.broadcast %cst_56 : f32 to vector<8x32xf32>
    %106 = arith.addf %105, %104 : vector<8x32xf32>
    %107 = arith.divf %105, %106 : vector<8x32xf32>
    %108 = vector.extract_strided_slice %101 {offsets = [0, 32], sizes = [8, 32], strides = [1, 1]} : vector<8x128xf32> to vector<8x32xf32>
    %109 = arith.negf %108 : vector<8x32xf32>
    %110 = math.exp %109 : vector<8x32xf32>
    %cst_57 = arith.constant 1.000000e+00 : f32
    %111 = vector.broadcast %cst_57 : f32 to vector<8x32xf32>
    %112 = arith.addf %111, %110 : vector<8x32xf32>
    %113 = arith.divf %111, %112 : vector<8x32xf32>
    %114 = vector.extract_strided_slice %101 {offsets = [0, 64], sizes = [8, 32], strides = [1, 1]} : vector<8x128xf32> to vector<8x32xf32>
    %115 = math.tanh %114 : vector<8x32xf32>
    %116 = vector.extract_strided_slice %101 {offsets = [0, 96], sizes = [8, 32], strides = [1, 1]} : vector<8x128xf32> to vector<8x32xf32>
    %117 = arith.negf %116 : vector<8x32xf32>
    %118 = math.exp %117 : vector<8x32xf32>
    %cst_58 = arith.constant 1.000000e+00 : f32
    %119 = vector.broadcast %cst_58 : f32 to vector<8x32xf32>
    %120 = arith.addf %119, %118 : vector<8x32xf32>
    %121 = arith.divf %119, %120 : vector<8x32xf32>
    %122 = arith.mulf %113, %51 : vector<8x32xf32>
    %123 = arith.mulf %107, %115 : vector<8x32xf32>
    %124 = arith.addf %122, %123 : vector<8x32xf32>
    %125 = math.tanh %124 : vector<8x32xf32>
    %126 = arith.mulf %121, %125 : vector<8x32xf32>
    %c0_59 = arith.constant 0 : index
    %c0_60 = arith.constant 0 : index
    %c0_61 = arith.constant 0 : index
    %127 = vector.load %arg11[%c0_59, %c0_60, %c0_61] : memref<2x8x32xf32, #tpu.memory_space<vmem>>, vector<1x8x32xf32>
    %128 = vector.shape_cast %127 : vector<1x8x32xf32> to vector<8x32xf32>
    %129 = vector.shape_cast %89 : vector<8x32xf32> to vector<1x8x32xf32>
    tpu.vector_store %arg11[%c0_59, %c0_60, %c0_61], %129 {strides = array<i32>} : memref<2x8x32xf32, #tpu.memory_space<vmem>>, vector<1x8x32xf32>,
    %c1_62 = arith.constant 1 : index
    %c0_63 = arith.constant 0 : index
    %c0_64 = arith.constant 0 : index
    %130 = vector.load %arg11[%c1_62, %c0_63, %c0_64] : memref<2x8x32xf32, #tpu.memory_space<vmem>>, vector<1x8x32xf32>
    %131 = vector.shape_cast %130 : vector<1x8x32xf32> to vector<8x32xf32>
    %132 = vector.shape_cast %126 : vector<8x32xf32> to vector<1x8x32xf32>
    tpu.vector_store %arg11[%c1_62, %c0_63, %c0_64], %132 {strides = array<i32>} : memref<2x8x32xf32, #tpu.memory_space<vmem>>, vector<1x8x32xf32>,
    %c0_65 = arith.constant 0 : index
    %c0_66 = arith.constant 0 : index
    %c0_67 = arith.constant 0 : index
    %133 = vector.load %arg12[%c0_65, %c0_66, %c0_67] : memref<2x8x32xf32, #tpu.memory_space<vmem>>, vector<1x8x32xf32>
    %134 = vector.shape_cast %133 : vector<1x8x32xf32> to vector<8x32xf32>
    %135 = vector.shape_cast %87 : vector<8x32xf32> to vector<1x8x32xf32>
    tpu.vector_store %arg12[%c0_65, %c0_66, %c0_67], %135 {strides = array<i32>} : memref<2x8x32xf32, #tpu.memory_space<vmem>>, vector<1x8x32xf32>,
    %c1_68 = arith.constant 1 : index
    %c0_69 = arith.constant 0 : index
    %c0_70 = arith.constant 0 : index
    %136 = vector.load %arg12[%c1_68, %c0_69, %c0_70] : memref<2x8x32xf32, #tpu.memory_space<vmem>>, vector<1x8x32xf32>
    %137 = vector.shape_cast %136 : vector<1x8x32xf32> to vector<8x32xf32>
    %138 = vector.shape_cast %124 : vector<8x32xf32> to vector<1x8x32xf32>
    tpu.vector_store %arg12[%c1_68, %c0_69, %c0_70], %138 {strides = array<i32>} : memref<2x8x32xf32, #tpu.memory_space<vmem>>, vector<1x8x32xf32>,
    return
  }
}

</mosaic_0001>

<bundles_post_ra>
// kernel: tpu_custom_call.1
= control target key start
LH: loop header
LB: loop body
LE: loop exit
PB: predicated region body
PF: predicated region fallthrough
CT: control target
= control target key end

     0   :  { %18 = vsyncpa [#allocation3], 0  ;;  %s2497_s0 = inlined_call_operand.hbm [shape: f32[2,8,64], index: 0, kind: input, shape index: {}]   ;;  %s2498_s1 = inlined_call_operand.hbm [shape: f32[2,8,8,64], index: 1, kind: input, shape index: {}]   ;;  %s2499_s2 = inlined_call_operand.hbm [shape: f32[2,8,8,32], index: 2, kind: input, shape index: {}]   ;;  %s2500_s3 = inlined_call_operand.hbm [shape: f32[8,64], index: 3, kind: input, shape index: {}]   ;;  %s2501_s4 = inlined_call_operand.hbm [shape: f32[2,8,32], index: 4, kind: input, shape index: {}]   ;;  %s2502_s5 = inlined_call_operand.hbm [shape: bf16[64,128], index: 5, kind: input, shape index: {}]   ;;  %s2503_s6 = inlined_call_operand.vmem [shape: bf16[32,128], index: 6, kind: input, shape index: {}]   ;;  %s2504_s7 = inlined_call_operand.vmem [shape: f32[1,128], index: 7, kind: input, shape index: {}]   ;;  %s2505_s8 = inlined_call_operand.hbm [shape: bf16[32,128], index: 8, kind: input, shape index: {}]   ;;  %s2506_s9 = inlined_call_operand.vmem [shape: bf16[32,128], index: 9, kind: input, shape index: {}]   ;;  %s2507_s10 = inlined_call_operand.vmem [shape: f32[1,128], index: 10, kind: input, shape index: {}]   ;;  %s2508_s11 = inlined_call_operand.hbm [shape: f32[2,8,32], index: 11, kind: output, shape index: {0}]   ;;  %s2509_s12 = inlined_call_operand.hbm [shape: f32[2,8,32], index: 12, kind: output, shape index: {1}]  }
   0x1   :  { %19 = vsyncpa [#allocation6], 0 }
   0x2   :  { %20 = vsyncpa [#allocation9], 0 }
   0x3   :  { %21 = vsyncpa [#allocation12], 0 }
   0x4   :  { %22 = vsyncpa [#allocation4], 0 }
   0x5   :  { %23 = vsyncpa [#allocation16], 0  ;;  %s1919_s21 = smov [#allocation5]   ;;  %s1920_s23 = smov [#allocation8]  }
   0x6   :  { %s41_s22 = sshll.u32 %s1919_s21, 4  ;;  %s66_s24 = sshll.u32 %s1920_s23, 4  ;;  %s42_s22 = int_to_ptr.vmem [resolvable:$true] %s41_s22  ;;  %s67_s24 = int_to_ptr.vmem [resolvable:$true] %s66_s24 }
   0x7   :  { %s1709_s27 = scalar_lea.hbm %s2498_s1, 2048 }
   0x8   :  { %p1710_p0 = scmp.ne.s32.totalorder %s2498_s1, %s1709_s27  ;;  %p1713_p1 = scmp.lt.u32.totalorder %s1709_s27, %s2498_s1 }
   0xa   :  { %p1715_p2 = pnand %p1713_p1, %p1710_p0 }
   0xc   :  { %1718 = shalt.err (!%p1715_p2)
}
   0xd   :  { %s1719_s14 = scalar_lea.vmem %s42_s22, 2048  ;;  %p1724_p4 = scmp.lt.s32.totalorder %s42_s22, %s42_s22 }
   0xe   :  { %p1720_p3 = scmp.ne.s32.totalorder %s42_s22, %s1719_s14  ;;  %p1725_p5 = scmp.lt.s32.totalorder %s1719_s14, %s1719_s14 }
  0x10   :  { %p1726_p6 = por %p1725_p5, %p1724_p4 }
  0x12   :  { %p1727_p7 = pnand %p1726_p6, %p1720_p3 }
  0x14   :  { %1730 = shalt.err (!%p1727_p7)
}
  0x15   :  { %s1921_s15 = smov 128   ;;  %s1922_s16 = smov 8  }
  0x16   :  { %47 = dma.hbm_to_vmem [thread:$0]  %s2498_s1, 2048, %s42_s22, [#allocation6], %s1921_s15, %s1921_s15, %s1922_s16  }
  0x17   :  { %s1731_s21 = scalar_lea.hbm %s2500_s3, 128 }
  0x18   :  { %p1732_p8 = scmp.ne.s32.totalorder %s2500_s3, %s1731_s21  ;;  %p1735_p9 = scmp.lt.u32.totalorder %s1731_s21, %s2500_s3 }
  0x1a   :  { %p1737_p10 = pnand %p1735_p9, %p1732_p8 }
  0x1c   :  { %1740 = shalt.err (!%p1737_p10)
}
  0x1d   :  { %s1741_s28 = scalar_lea.vmem %s67_s24, 128  ;;  %p1746_p12 = scmp.lt.s32.totalorder %s67_s24, %s67_s24 }
  0x1e   :  { %p1742_p11 = scmp.ne.s32.totalorder %s67_s24, %s1741_s28  ;;  %p1747_p13 = scmp.lt.s32.totalorder %s1741_s28, %s1741_s28 }
  0x20   :  { %p1748_p0 = por %p1747_p13, %p1746_p12 }
  0x22   :  { %p1749_p1 = pnand %p1748_p0, %p1742_p11 }
  0x24   :  { %1752 = shalt.err (!%p1749_p1)
}
  0x25   :  { %69 = dma.hbm_to_vmem [thread:$0]  %s2500_s3, 128, %s67_s24, [#allocation9]  }
  0x26   :  { %s1923_s29 = smov [#allocation11]   ;;  %s1753_s17 = scalar_lea.hbm %s2502_s5, 512 }
  0x27   :  { %s87_s30 = sshll.u32 %s1923_s29, 4  ;;  %p1754_p2 = scmp.ne.s32.totalorder %s2502_s5, %s1753_s17  ;;  %s88_s30 = int_to_ptr.vmem [resolvable:$true] %s87_s30 }
  0x28   :  { %p1757_p3 = scmp.lt.u32.totalorder %s1753_s17, %s2502_s5 }
  0x2a   :  { %p1759_p4 = pnand %p1757_p3, %p1754_p2 }
  0x2c   :  { %1762 = shalt.err (!%p1759_p4)
}
  0x2d   :  { %s1763_s23 = scalar_lea.vmem %s88_s30, 512  ;;  %p1768_p6 = scmp.lt.s32.totalorder %s88_s30, %s88_s30 }
  0x2e   :  { %p1764_p5 = scmp.ne.s32.totalorder %s88_s30, %s1763_s23  ;;  %p1769_p7 = scmp.lt.s32.totalorder %s1763_s23, %s1763_s23 }
  0x30   :  { %p1770_p8 = por %p1769_p7, %p1768_p6 }
  0x32   :  { %p1771_p9 = pnand %p1770_p8, %p1764_p5 }
  0x34   :  { %1774 = shalt.err (!%p1771_p9)
}
  0x35   :  { %s1924_s3 = smov 64   ;;  %s1925_s24 = smov 4  }
  0x36   :  { %93 = dma.hbm_to_vmem [thread:$0]  %s2502_s5, 512, %s88_s30, [#allocation12], %s1924_s3, %s1924_s3, %s1925_s24  }
  0x37   :  { %s1926_s27 = smov [#allocation2]   ;;  %s1927_s1 = smov [#allocation7]  }
  0x38   :  { %s29_s28 = sshll.u32 %s1926_s27, 4  ;;  %s53_s22 = sshll.u32 %s1927_s1, 4  ;;  %s30_s28 = int_to_ptr.vmem [resolvable:$true] %s29_s28  ;;  %s54_s22 = int_to_ptr.vmem [resolvable:$true] %s53_s22 }
  0x39   :  { %s1775_s14 = scalar_lea.hbm %s2497_s0, 256 }
  0x3a   :  { %p1776_p10 = scmp.ne.s32.totalorder %s2497_s0, %s1775_s14  ;;  %p1779_p11 = scmp.lt.u32.totalorder %s1775_s14, %s2497_s0 }
  0x3c   :  { %p1781_p12 = pnand %p1779_p11, %p1776_p10 }
  0x3e   :  { %1784 = shalt.err (!%p1781_p12)
}
  0x3f   :  { %s1785_s5 = scalar_lea.vmem %s30_s28, 256  ;;  %p1790_p0 = scmp.lt.s32.totalorder %s30_s28, %s30_s28 }
  0x40   :  { %p1786_p13 = scmp.ne.s32.totalorder %s30_s28, %s1785_s5  ;;  %p1791_p1 = scmp.lt.s32.totalorder %s1785_s5, %s1785_s5 }
  0x42   :  { %p1792_p2 = por %p1791_p1, %p1790_p0 }
  0x44   :  { %p1793_p3 = pnand %p1792_p2, %p1786_p13 }
  0x46   :  { %1796 = shalt.err (!%p1793_p3)
}
  0x47   :  { %35 = dma.hbm_to_vmem [thread:$0]  %s2497_s0, 256, %s30_s28, [#allocation3], %s1921_s15, %s1921_s15, %s1922_s16  }
  0x48   :  { %s1797_s26 = scalar_lea.hbm %s2499_s2, 2048 }
  0x49   :  { %p1798_p4 = scmp.ne.s32.totalorder %s2499_s2, %s1797_s26  ;;  %p1801_p5 = scmp.lt.u32.totalorder %s1797_s26, %s2499_s2 }
  0x4b   :  { %p1803_p6 = pnand %p1801_p5, %p1798_p4 }
  0x4d   :  { %1806 = shalt.err (!%p1803_p6)
}
  0x4e   :  { %s1807_s14 = scalar_lea.vmem %s54_s22, 2048  ;;  %p1812_p8 = scmp.lt.s32.totalorder %s54_s22, %s54_s22 }
  0x4f   :  { %p1808_p7 = scmp.ne.s32.totalorder %s54_s22, %s1807_s14  ;;  %p1813_p9 = scmp.lt.s32.totalorder %s1807_s14, %s1807_s14 }
  0x51   :  { %p1814_p10 = por %p1813_p9, %p1812_p8 }
  0x53   :  { %p1815_p11 = pnand %p1814_p10, %p1808_p7 }
  0x55   :  { %1818 = shalt.err (!%p1815_p11)
}
  0x56   :  { %59 = dma.hbm_to_vmem [thread:$0]  %s2499_s2, 2048, %s54_s22, [#allocation6], %s1921_s15, %s1921_s15, %s1922_s16  }
  0x57   :  { %s1928_s17 = smov [#allocation10]   ;;  %s1929_s19 = smov [#allocation13]  }
  0x58   :  { %s75_s18 = sshll.u32 %s1928_s17, 4  ;;  %s103_s20 = sshll.u32 %s1929_s19, 4  ;;  %s76_s18 = int_to_ptr.vmem [resolvable:$true] %s75_s18  ;;  %s104_s20 = int_to_ptr.vmem [resolvable:$true] %s103_s20 }
  0x59   :  { %s1819_s21 = scalar_lea.hbm %s2501_s4, 256 }
  0x5a   :  { %p1820_p12 = scmp.ne.s32.totalorder %s2501_s4, %s1819_s21  ;;  %p1823_p13 = scmp.lt.u32.totalorder %s1819_s21, %s2501_s4 }
  0x5c   :  { %p1825_p0 = pnand %p1823_p13, %p1820_p12 }
  0x5e   :  { %1828 = shalt.err (!%p1825_p0)
}
  0x5f   :  { %s1829_s2 = scalar_lea.vmem %s76_s18, 256  ;;  %p1834_p2 = scmp.lt.s32.totalorder %s76_s18, %s76_s18 }
  0x60   :  { %p1830_p1 = scmp.ne.s32.totalorder %s76_s18, %s1829_s2  ;;  %p1835_p3 = scmp.lt.s32.totalorder %s1829_s2, %s1829_s2 }
  0x62   :  { %p1836_p4 = por %p1835_p3, %p1834_p2 }
  0x64   :  { %p1837_p5 = pnand %p1836_p4, %p1830_p1 }
  0x66   :  { %1840 = shalt.err (!%p1837_p5)
}
  0x67   :  { %81 = dma.hbm_to_vmem [thread:$0]  %s2501_s4, 256, %s76_s18, [#allocation9], %s1921_s15, %s1921_s15, %s1922_s16  }
  0x68   :  { %s1841_s14 = scalar_lea.hbm %s2505_s8, 256 }
  0x69   :  { %p1842_p6 = scmp.ne.s32.totalorder %s2505_s8, %s1841_s14  ;;  %p1845_p7 = scmp.lt.u32.totalorder %s1841_s14, %s2505_s8 }
  0x6b   :  { %p1847_p8 = pnand %p1845_p7, %p1842_p6 }
  0x6d   :  { %1850 = shalt.err (!%p1847_p8)
}
  0x6e   :  { %s1851_s5 = scalar_lea.vmem %s104_s20, 256  ;;  %p1856_p10 = scmp.lt.s32.totalorder %s104_s20, %s104_s20 }
  0x6f   :  { %p1852_p9 = scmp.ne.s32.totalorder %s104_s20, %s1851_s5  ;;  %p1857_p11 = scmp.lt.s32.totalorder %s1851_s5, %s1851_s5 }
  0x71   :  { %p1858_p12 = por %p1857_p11, %p1856_p10 }
  0x73   :  { %p1859_p13 = pnand %p1858_p12, %p1852_p9 }
  0x75   :  { %1862 = shalt.err (!%p1859_p13)
}
  0x76   :  { %109 = dma.hbm_to_vmem [thread:$0]  %s2505_s8, 256, %s104_s20, [#allocation12], %s1924_s3, %s1924_s3, %s1925_s24  }
  0x77   :  { %1907 = dma.done.wait [#allocation3], 256  }
  0x78   :  { %1908 = vsyncadd [#allocation3], 4294967040 }
  0x79   :  { %1909 = dma.done.wait [#allocation6], 4096  }
  0x7a   :  { %1910 = vsyncadd [#allocation6], 4294963200 }
  0x7b   :  { %1911 = dma.done.wait [#allocation9], 384  }
  0x7c   :  { %1912 = vsyncadd [#allocation9], 4294966912 }
  0x7d   :  { %1913 = dma.done.wait [#allocation12], 768  }
  0x7e   :  { %1914 = vsyncadd [#allocation12], 4294966528  ;;  %v158_v0 = vlaneseq  ;;  %v1930_v1 = vmov 1966171168   ;;  %v136_v8 = vld [vmem:[#allocation2] sm:$0xff]  ;;  %v137_v12 = vld [vmem:[#allocation5] sm:$0xff] }
  0x7f   :  { %v156_v2 = vunpack.c.l.s4 %v1930_v1  ;;  %v154_v11 = vcombine.high %v136_v8, %v136_v8  ;;  %vm251_vm0 = vcmask 523264   ;;  %v139_v16 = vld [vmem:[#allocation5 + $0x10] sm:$0xff]  ;;  %v138_v17 = vld [vmem:[#allocation5 + $0x8] sm:$0xff]  ;;  %v141_v21 = vld [vmem:[#allocation5 + $0x20] sm:$0xff]  ;;  %vm326_vm1 = vcmask 1041409   ;;  %s1936_s22 = smov [#allocation14]  }
  0x80   :  { %v2105_v3 = vshrl.u32 %v158_v0, 7  ;;  %v293_v4 = vand.u32 127, %v158_v0  ;;  %v140_v23 = vld [vmem:[#allocation5 + $0x18] sm:$0xff]  ;;  %v142_v37 = vld [vmem:[#allocation5 + $0x28] sm:$0xff]  ;;  %v143_v44 = vld [vmem:[#allocation5 + $0x30] sm:$0xff]  ;;  %vm328_vm2 = vcmask 1042434  }
  0x81   :  { %v157_v5 = vunpack.c.0.s8 %v156_v2  ;;  %v144_v48 = vld [vmem:[#allocation5 + $0x38] sm:$0xff]  ;;  %vm330_vm3 = vcmask 1043459   ;;  %vm332_vm4 = vcmask 1044484   ;;  %vm334_vm5 = vcmask 1045509   ;;  %s1525_s1 = sshll.u32 %s1936_s22, 4  ;;  %s1937_s29 = smov [#allocation15]   ;;  %s1526_s1 = int_to_ptr.vmem [resolvable:$true] %s1525_s1 }
  0x82   :  { %v2108_v6 = vsub.s32 %v293_v4, %v2105_v3  ;;  %v2115_v10 = vsub.s32 0, %v2105_v3  ;;  %vm336_vm6 = vcmask 1046534   ;;  %vm338_vm7 = vcmask 1047559   ;;  %s1537_s13 = sshll.u32 %s1937_s29, 4  ;;  %s1863_s14 = scalar_lea.vmem %s1526_s1, 256  ;;  %s1538_s13 = int_to_ptr.vmem [resolvable:$true] %s1537_s13 }
  0x83   :  { %v2111_v7 = vsub.s32 %v157_v5, %v2105_v3  ;;  %vm341_vm8 = vcmask 64512   ;;  %vm1933_vm9 = vmmov 0   ;;  %vm583_vm10 = vcmask 261120   ;;  %p1864_p0 = scmp.ne.s32.totalorder %s1526_s1, %s1863_s14  ;;  %p1868_p1 = scmp.lt.s32.totalorder %s1526_s1, %s1526_s1 }
  0x84   :  { %p1869_p2 = scmp.lt.s32.totalorder %s1863_s14, %s1863_s14 }
  0x85   :  { %v161_v9 = vrot.slane %v136_v8, %v2111_v7  ;;  %v168_v15 = vrot.slane %v154_v11, %v2111_v7 }
  0x86   :  { %p1870_p3 = por %p1869_p2, %p1868_p1 }
  0x87   :  { %v177_v13 = vrot.slane %v161_v9, %v2111_v7  ;;  %v169_v14 = vcombine.high %v161_v9, %v161_v9  ;;  %v184_v22 = vrot.slane %v168_v15, %v2111_v7  ;;  %v170_v24 = vcombine.high %v168_v15, %v168_v15 }
  0x88   :  { %p1871_p4 = pnand %p1870_p3, %p1864_p0 }
  0x89   :  { %v206_v18 = vrot.slane %v177_v13, %v2115_v10  ;;  %v199_v19 = vcombine.high %v177_v13, %v177_v13  ;;  %v191_v20 = vrot.slane %v169_v14, %v2111_v7  ;;  %v222_v29 = vrot.slane %v184_v22, %v2115_v10 }
  0x8a   :  { %v198_v30 = vrot.slane %v170_v24, %v2111_v7  ;;  %v200_v31 = vcombine.high %v184_v22, %v184_v22 }
  0x8b   :  { %v243_v25 = vmul.f32 %v206_v18, %v137_v12  ;;  %v214_v26 = vrot.slane %v199_v19, %v2115_v10  ;;  %v210_v27 = vrot.slane %v191_v20, %v2115_v10  ;;  %v201_v28 = vcombine.high %v191_v20, %v191_v20 }
  0x8c   :  { %v247_v36 = vmul.f32 %v222_v29, %v141_v21  ;;  %v226_v38 = vrot.slane %v198_v30, %v2115_v10  ;;  %v202_v39 = vcombine.high %v198_v30, %v198_v30  ;;  %v230_v43 = vrot.slane %v200_v31, %v2115_v10  ;;  %v1648_v29 = vld [vmem:[%s2503_s6] sm:$0xff]   ;;  %v1647_v31 = vld [vmem:[#allocation11 + $0x8] sm:$0xff]  }
  0x8d   :  { %v252_v32 = vsel %vm251_vm0, %v243_v25, 0.0  ;;  %v245_v33 = vmul.f32 %v214_v26, %v139_v16  ;;  %v244_v34 = vmul.f32 %v210_v27, %v138_v17  ;;  %v218_v35 = vrot.slane %v201_v28, %v2115_v10  ;;  %v1646_v28 = vld [vmem:[#allocation11] sm:$0xff]  }
  0x8e   :  { %253 = vadd.xlane.f32.xlu0 %v252_v32  ;;  %v248_v46 = vmul.f32 %v226_v38, %v142_v37  ;;  %v234_v47 = vrot.slane %v202_v39, %v2115_v10  ;;  %v264_v49 = vsel %vm251_vm0, %v247_v36, 0.0  ;;  %v249_v50 = vmul.f32 %v230_v43, %v143_v44  ;;  %v1650_v32 = vld [vmem:[%s2503_s6 + $0x8] sm:$0xff]   ;;  %v1651_v36 = vld [vmem:[#allocation11 + $0x18] sm:$0xff]   ;;  %v1135_v37 = vld [vmem:[#allocation8] sm:$0xff] }
  0x8f   :  { %v258_v40 = vsel %vm251_vm0, %v245_v33, 0.0  ;;  %v255_v41 = vsel %vm251_vm0, %v244_v34, 0.0  ;;  %v246_v42 = vmul.f32 %v218_v35, %v140_v23  ;;  %v1931_v27 = vmov 0   ;;  %v1136_v33 = vld [vmem:[#allocation10] sm:$0xff] }
  0x90   :  { %259 = vadd.xlane.f32.xlu1 %v258_v40  ;;  %v267_v51 = vsel %vm251_vm0, %v248_v46, 0.0  ;;  %v250_v52 = vmul.f32 %v234_v47, %v144_v48  ;;  %v270_v53 = vsel %vm251_vm0, %v249_v50, 0.0  ;;  %1644 = vset.pattern.permute.xlu0 %v1931_v27  ;;  %v1932_v30 = vmov 0.0   ;;  %v1649_v35 = vld [vmem:[#allocation11 + $0x10] sm:$0xff]  }
  0x91   :  { %v261_v45 = vsel %vm251_vm0, %v246_v42, 0.0  ;;  %1643 = vset.pattern.permute.xlu1 %v1931_v27  ;;  %1596 = vmatprep.subr.bf16.mxu1 %v1932_v30  ;;  %v1146_v34 = vpack.c.bf16 %v1136_v33, %v1136_v33  ;;  %v1137_v38 = vpack.c.bf16 %v1135_v37, %v1135_v37  ;;  %v2200_v39 = vsub.s32 1, %v2105_v3 }
  0x92   :  { %256 = vadd.xlane.f32.xlu0 %v255_v41  ;;  %v273_v54 = vsel %vm251_vm0, %v250_v52, 0.0  ;;  %1588 = vmatprep.subr.bf16.mxu0 %v1932_v30  ;;  %v2203_v40 = vsub.s32 2, %v2105_v3  ;;  %v2206_v41 = vsub.s32 3, %v2105_v3  ;;  %v2212_v46 = vsub.s32 4, %v2105_v3 }
  0x93   :  { %1597 = vmatpush3.bf16.msra.mxu1 %v1646_v28  ;;  %1589 = vmatpush3.bf16.msra.mxu0 %v1648_v29 }
  0x94   :  { %262 = vadd.xlane.f32.xlu1 %v261_v45  ;;  %1598 = vmatprep.subr.bf16.mxu1 %v1932_v30 }
  0x95   :  { %1590 = vmatprep.subr.bf16.mxu0 %v1932_v30  ;;  %1592 = vmatprep.mubr.msk.bf16.mxu0 %vm1933_vm9, %v1932_v30 }
  0x96   :  { %265 = vadd.xlane.f32.xlu0 %v264_v49  ;;  %1604 = vmatprep.mubr.msk.bf16.mxu1 %vm1933_vm9, %v1932_v30 }
  0x97   :  { %1599 = vmatpush3.bf16.msra.mxu1 %v1647_v31  ;;  %1591 = vmatpush3.bf16.msra.mxu0 %v1650_v32 }
  0x98   :  { %268 = vadd.xlane.f32.xlu1 %v267_v51  ;;  %1600 = vmatprep.subr.bf16.mxu1 %v1932_v30 }
  0x99   :  { %1608 = vmatprep.subr.bf16.mxu0 %v1932_v30 }
  0x9a   :  { %271 = vadd.xlane.f32.xlu0 %v270_v53  ;;  %1593 = vmatmul.mubr.msk.bf16.vlgmr.msra.gmra.mrb[0].mxu0 %vm583_vm10, %v1146_v34  ;;  %v2219_v53 = vsub.s32 5, %v2105_v3 }
  0x9b   :  { %1601 = vmatpush3.bf16.msra.mxu1 %v1649_v35  ;;  %1612 = vmatprep.mubr.msk.bf16.mxu0 %vm1933_vm9, %v1932_v30 }
  0x9c   :  { %274 = vadd.xlane.f32.xlu1 %v273_v54  ;;  %1602 = vmatprep.subr.bf16.mxu1 %v1932_v30 }
  0x9f   :  { %1603 = vmatpush3.bf16.msra.mxu1 %v1651_v36 }
  0xa2   :  { %1605 = vmatmul.mubr.msk.bf16.vlgmr.msra.gmra.mrb[0].mxu1 %vm251_vm0, %v1137_v38 }
 0x11b   :  { %v254_v55 = vpop.xlane.xlu0 %253 }
 0x11c   :  { %v2138_v57 = vmul.f32 0.125, %v254_v55 }
 0x11d   :  { %v260_v56 = vpop.xlane.xlu1 %259 }
 0x11e   :  { %v2140_v58 = vmul.f32 0.125, %v260_v56  ;;  %v297_v62 = vrot.slane %v2138_v57, %v2108_v6 }
 0x11f   :  { %v257_v59 = vpop.xlane.xlu0 %256 }
 0x120   :  { %v2142_v60 = vmul.f32 0.125, %v257_v59  ;;  %v305_v1 = vrot.slane %v2140_v58, %v2108_v6  ;;  %v2224_v59 = vsub.s32 6, %v2105_v3 }
 0x121   :  { %v263_v61 = vpop.xlane.xlu1 %262 }
 0x122   :  { %v301_v63 = vrot.slane %v2142_v60, %v2108_v6  ;;  %v2148_v0 = vmul.f32 0.125, %v263_v61  ;;  %v2229_v61 = vsub.s32 7, %v2105_v3 }
 0x123   :  { %v266_v2 = vpop.xlane.xlu0 %265 }
 0x124   :  { %v327_v4 = vsel %vm326_vm1, %v301_v63, %v297_v62  ;;  %v309_v5 = vrot.slane %v2148_v0, %v2108_v6  ;;  %v2155_v8 = vmul.f32 0.125, %v266_v2 }
 0x125   :  { %v329_v9 = vsel %vm328_vm2, %v305_v1, %v327_v4  ;;  %v269_v11 = vpop.xlane.xlu1 %268 }
 0x126   :  { %v331_v12 = vsel %vm330_vm3, %v309_v5, %v329_v9  ;;  %v313_v13 = vrot.slane %v2155_v8, %v2108_v6  ;;  %v2161_v14 = vmul.f32 0.125, %v269_v11 }
 0x127   :  { %v272_v15 = vpop.xlane.xlu0 %271 }
 0x128   :  { %v333_v16 = vsel %vm332_vm4, %v313_v13, %v331_v12  ;;  %v317_v17 = vrot.slane %v2161_v14, %v2108_v6  ;;  %v2166_v18 = vmul.f32 0.125, %v272_v15 }
 0x129   :  { %v275_v19 = vpop.xlane.xlu1 %274 }
 0x12a   :  { %v321_v20 = vrot.slane %v2166_v18, %v2108_v6  ;;  %v2170_v21 = vmul.f32 0.125, %v275_v19  ;;  %v335_v22 = vsel %vm334_vm5, %v317_v17, %v333_v16 }
 0x12c   :  { %v325_v23 = vrot.slane %v2170_v21, %v2108_v6  ;;  %v337_v24 = vsel %vm336_vm6, %v321_v20, %v335_v22 }
 0x12e   :  { %v339_v25 = vsel %vm338_vm7, %v325_v23, %v337_v24 }
 0x12f   :  { %v342_v26 = vsel %vm341_vm8, %v339_v25, -inf }
 0x130   :  { %343 = vmax.xlane.f32.xlu0 %v342_v26 }
 0x175   :  { %v1267_v22 = vpop.f32.mrb[0].mxu1 }
 0x176   :  { %v1606_v24 = vpop.f32.mrb[1].mxu1 }
 0x177   :  { %v1270_v25 = vpop.f32.mrb[2].mxu1 }
 0x178   :  { %v1607_v27 = vpop.f32.mrb[3].mxu1  ;;  %v644_v25 = vld [vmem:[#allocation5 + $0x48] sm:$0xff] }
 0x1bd   :  { %v344_v42 = vpop.xlane.xlu0 %343 }
 0x1be   :  { %v349_v43 = vrot.slane %v344_v42, %v2115_v10  ;;  %v353_v44 = vrot.slane %v344_v42, %v2200_v39  ;;  %v357_v45 = vrot.slane %v344_v42, %v2203_v40  ;;  %v361_v47 = vrot.slane %v344_v42, %v2206_v41 }
 0x1bf   :  { %v365_v54 = vrot.slane %v344_v42, %v2212_v46  ;;  %v373_v62 = vrot.slane %v344_v42, %v2224_v59  ;;  %v377_v4 = vrot.slane %v344_v42, %v2229_v61 }
 0x1c0   :  { %v386_v48 = vsub.f32 %v2138_v57, %v349_v43  ;;  %v387_v49 = vsub.f32 %v2142_v60, %v353_v44  ;;  %v388_v50 = vsub.f32 %v2140_v58, %v357_v45  ;;  %v389_v55 = vsub.f32 %v2148_v0, %v361_v47 }
 0x1c1   :  { %v369_v57 = vrot.slane %v344_v42, %v2219_v53  ;;  %v390_v60 = vsub.f32 %v2155_v8, %v365_v54  ;;  %v392_v5 = vsub.f32 %v2166_v18, %v373_v62  ;;  %v393_v9 = vsub.f32 %v2170_v21, %v377_v4  ;;  %v1200_v18 = vpop.f32.mrb[0].mxu0 }
 0x1c2   :  { %v394_v51 = vmul.f32 1.442695, %v386_v48  ;;  %v396_v52 = vmul.f32 1.442695, %v387_v49  ;;  %v398_v56 = vmul.f32 1.442695, %v388_v50  ;;  %v1268_v23 = vadd.f32 %v1267_v22, %v1200_v18 }
 0x1c3   :  { %v400_v58 = vmul.f32 1.442695, %v389_v55  ;;  %v391_v63 = vsub.f32 %v2161_v14, %v369_v57  ;;  %v402_v0 = vmul.f32 1.442695, %v390_v60  ;;  %v406_v11 = vmul.f32 1.442695, %v392_v5 }
 0x1c4   :  { %1657 = vpow2.f32 %v394_v51  ;;  %v408_v13 = vmul.f32 1.442695, %v393_v9  ;;  %v1594_v19 = vpop.f32.mrb[1].mxu0  ;;  %v1564_v55 = vld [vmem:[%s2504_s7] ss:$0 sm:$0xff]  ;;  %s1934_s7 = smov 32  }
 0x1c5   :  { %1659 = vpow2.f32 %v396_v52  ;;  %v404_v8 = vmul.f32 1.442695, %v391_v63  ;;  %v1203_v20 = vpop.f32.mrb[2].mxu0  ;;  %v2279_v60 = vadd.f32 %v1564_v55, %v1268_v23  ;;  %v641_v23 = vld [vmem:[#allocation2 + $0x8] sm:$0xff] }
 0x1c6   :  { %1661 = vpow2.f32 %v398_v56  ;;  %v1595_v21 = vpop.f32.mrb[3].mxu0  ;;  %v2300_v24 = vrot.slane %v641_v23, %v2111_v7  ;;  %v148_v55 = vld [vmem:[#allocation7 + $0x18] sm:$0xff] }
 0x1c7   :  { %1663 = vpow2.f32 %v400_v58 }
 0x1c8   :  { %1665 = vpow2.f32 %v402_v0 }
 0x1c9   :  { %1667 = vpow2.f32 %v404_v8 }
 0x1ca   :  { %1669 = vpow2.f32 %v406_v11 }
 0x1cb   :  { %1671 = vpow2.f32 %v408_v13 }
 0x1cc   :  { %1673 = vtanh.f32 %v2279_v60 }
 0x1ce   :  { %v2233_v1 = vpop.eup %1657 }
 0x1cf   :  { %v2235_v2 = vpop.eup %1659  ;;  %419 = vperm.xlu1 %1643, %v2233_v1  }
 0x1d0   :  { %422 = vperm.xlu0 %1644, %v2235_v2   ;;  %v2241_v3 = vpop.eup %1661 }
 0x1d1   :  { %v2245_v12 = vpop.eup %1663 }
 0x1d2   :  { %v2248_v14 = vpop.eup %1665 }
 0x1d3   :  { %425 = vperm.xlu1 %1643, %v2241_v3   ;;  %v2251_v15 = vpop.eup %1667 }
 0x1d4   :  { %v2254_v16 = vpop.eup %1669 }
 0x1d5   :  { %v2257_v17 = vpop.eup %1671 }
 0x1d6   :  { %v1674_v58 = vpop.eup %1673 }
 0x1d7   :  { %428 = vperm.xlu1 %1643, %v2245_v12  }
 0x1db   :  { %431 = vperm.xlu1 %1643, %v2248_v14  }
 0x1df   :  { %434 = vperm.xlu1 %1643, %v2251_v15  }
 0x1e3   :  { %437 = vperm.xlu1 %1643, %v2254_v16  }
 0x1e7   :  { %440 = vperm.xlu1 %1643, %v2257_v17  }
 0x24e   :  { %v420_v26 = vpop.permute.xlu1 %419 }
 0x24f   :  { %v423_v32 = vpop.permute.xlu0 %422  ;;  %v445_v35 = vrot.slane %v420_v26, %v2108_v6  ;;  %v661_v26 = vcombine.high %v641_v23, %v641_v23 }
 0x250   :  { %v449_v34 = vrot.slane %v423_v32, %v2108_v6  ;;  %v648_v32 = vld [vmem:[#allocation5 + $0x68] sm:$0xff] }
 0x252   :  { %v426_v28 = vpop.permute.xlu1 %425  ;;  %v474_v43 = vsel %vm326_vm1, %v449_v34, %v445_v35  ;;  %v650_v35 = vld [vmem:[#allocation5 + $0x78] sm:$0xff] }
 0x253   :  { %v453_v36 = vrot.slane %v426_v28, %v2108_v6  ;;  %v2310_v28 = vrot.slane %v661_v26, %v2111_v7 }
 0x255   :  { %v475_v45 = vsel %vm328_vm2, %v453_v36, %v474_v43 }
 0x256   :  { %v429_v29 = vpop.permute.xlu1 %428 }
 0x257   :  { %v457_v37 = vrot.slane %v429_v29, %v2108_v6  ;;  %v677_v29 = vcombine.high %v2310_v28, %v2310_v28 }
 0x259   :  { %v476_v48 = vsel %vm330_vm3, %v457_v37, %v475_v45  ;;  %v146_v45 = vld [vmem:[#allocation7 + $0x8] sm:$0xff] }
 0x25a   :  { %v432_v31 = vpop.permute.xlu1 %431 }
 0x25b   :  { %v461_v38 = vrot.slane %v432_v31, %v2108_v6  ;;  %v705_v31 = vrot.slane %v677_v29, %v2111_v7 }
 0x25d   :  { %v477_v49 = vsel %vm332_vm4, %v461_v38, %v476_v48  ;;  %v709_v34 = vcombine.high %v705_v31, %v705_v31  ;;  %v145_v48 = vld [vmem:[#allocation7] sm:$0xff] }
 0x25e   :  { %v435_v33 = vpop.permute.xlu1 %434 }
 0x25f   :  { %v465_v44 = vrot.slane %v435_v33, %v2108_v6  ;;  %v733_v33 = vrot.slane %v705_v31, %v2115_v10  ;;  %v741_v37 = vrot.slane %v709_v34, %v2115_v10 }
 0x261   :  { %v478_v51 = vsel %vm334_vm5, %v465_v44, %v477_v49  ;;  %v755_v36 = vmul.f32 %v733_v33, %v648_v32  ;;  %v147_v49 = vld [vmem:[#allocation7 + $0x10] sm:$0xff] }
 0x262   :  { %v438_v42 = vpop.permute.xlu1 %437 }
 0x263   :  { %v469_v47 = vrot.slane %v438_v42, %v2108_v6  ;;  %v773_v38 = vsel %vm251_vm0, %v755_v36, 0.0  ;;  %v757_v42 = vmul.f32 %v741_v37, %v650_v35 }
 0x265   :  { %v479_v54 = vsel %vm336_vm6, %v469_v47, %v478_v51  ;;  %v779_v43 = vsel %vm251_vm0, %v757_v42, 0.0 }
 0x266   :  { %v441_v50 = vpop.permute.xlu1 %440 }
 0x267   :  { %v473_v52 = vrot.slane %v441_v50, %v2108_v6 }
 0x269   :  { %v480_v56 = vsel %vm338_vm7, %v473_v52, %v479_v54 }
 0x26a   :  { %v482_v57 = vsel %vm341_vm8, %v480_v56, 0.0 }
 0x26b   :  { %483 = vadd.xlane.f32.xlu1 %v482_v57  ;;  %v1565_v57 = vmul.f32 -1.442695, %v2279_v60 }
 0x27c   :  { %1308 = vrot.lane.b32.xlu1 %v1674_v58, %s1924_s3 }
 0x2f8   :  { %v484_v62 = vpop.xlane.xlu1 %483 }
 0x2f9   :  { %1675 = vrcp.f32 %v484_v62 }
 0x2fa   :  { %1677 = vpow2.f32 %v1565_v57 }
 0x303   :  { %v1676_v63 = vpop.eup %1675 }
 0x304   :  { %v490_v0 = vrot.slane %v1676_v63, %v2115_v10  ;;  %v494_v5 = vrot.slane %v1676_v63, %v2200_v39  ;;  %v498_v9 = vrot.slane %v1676_v63, %v2203_v40  ;;  %v502_v13 = vrot.slane %v1676_v63, %v2206_v41  ;;  %v1678_v35 = vpop.eup %1677 }
 0x305   :  { %v506_v19 = vrot.slane %v1676_v63, %v2212_v46  ;;  %v510_v20 = vrot.slane %v1676_v63, %v2219_v53  ;;  %v514_v21 = vrot.slane %v1676_v63, %v2224_v59  ;;  %v518_v22 = vrot.slane %v1676_v63, %v2229_v61 }
 0x306   :  { %v527_v4 = vmul.f32 %v2233_v1, %v490_v0  ;;  %v528_v8 = vmul.f32 %v2235_v2, %v494_v5  ;;  %v529_v11 = vmul.f32 %v2241_v3, %v498_v9  ;;  %v530_v18 = vmul.f32 %v2245_v12, %v502_v13  ;;  %v149_v5 = vld [vmem:[#allocation7 + $0x20] sm:$0xff] }
 0x307   :  { %v531_v1 = vmul.f32 %v2248_v14, %v506_v19  ;;  %v532_v2 = vmul.f32 %v2251_v15, %v510_v20  ;;  %v533_v3 = vmul.f32 %v2254_v16, %v514_v21  ;;  %v534_v12 = vmul.f32 %v2257_v17, %v518_v22  ;;  %v150_v20 = vld [vmem:[#allocation7 + $0x28] sm:$0xff] }
 0x308   :  { %537 = vperm.xlu0 %1644, %v527_v4   ;;  %v676_v14 = vcombine.high %v2300_v24, %v2300_v24 }
 0x30a   :  { %v2305_v15 = vrot.slane %v676_v14, %v2111_v7 }
 0x30c   :  { %542 = vperm.xlu0 %1644, %v528_v8   ;;  %v717_v16 = vrot.slane %v2305_v15, %v2115_v10 }
 0x30e   :  { %v751_v27 = vmul.f32 %v717_v16, %v644_v25  ;;  %v151_v16 = vld [vmem:[#allocation7 + $0x30] sm:$0xff] }
 0x310   :  { %547 = vperm.xlu0 %1644, %v529_v11   ;;  %v761_v17 = vsel %vm251_vm0, %v751_v27, 0.0 }
 0x311   :  { %762 = vadd.xlane.f32.xlu1 %v761_v17 }
 0x314   :  { %552 = vperm.xlu0 %1644, %v530_v18  }
 0x315   :  { %774 = vadd.xlane.f32.xlu1 %v773_v38  ;;  %v152_v38 = vld [vmem:[#allocation7 + $0x38] sm:$0xff] }
 0x318   :  { %557 = vperm.xlu0 %1644, %v531_v1  }
 0x319   :  { %780 = vadd.xlane.f32.xlu1 %v779_v43 }
 0x31c   :  { %562 = vperm.xlu0 %1644, %v532_v2  }
 0x320   :  { %567 = vperm.xlu0 %1644, %v533_v3  }
 0x324   :  { %572 = vperm.xlu0 %1644, %v534_v12  }
 0x387   :  { %v538_v44 = vpop.permute.xlu0 %537 }
 0x388   :  { %v575_v52 = vmul.f32 %v538_v44, %v145_v48 }
 0x38a   :  { %v584_v63 = vsel %vm583_vm10, %v575_v52, 0.0 }
 0x38b   :  { %v543_v47 = vpop.permute.xlu0 %542  ;;  %v585_v11 = vrot.slane %v584_v63, 4 }
 0x38c   :  { %v576_v50 = vmul.f32 %v543_v47, %v146_v45 }
 0x38d   :  { %v586_v21 = vadd.f32 %v585_v11, %v584_v63 }
 0x38e   :  { %v591_v56 = vsel %vm583_vm10, %v576_v50, 0.0  ;;  %v1284_v50 = vadd.f32 1.0, %v1678_v35 }
 0x38f   :  { %v548_v51 = vpop.permute.xlu0 %547  ;;  %v592_v4 = vrot.slane %v591_v56, 4  ;;  %v587_v17 = vrot.slane %v586_v21, 2 }
 0x390   :  { %v577_v54 = vmul.f32 %v548_v51, %v147_v49  ;;  %1679 = vrcp.f32 %v1284_v50 }
 0x391   :  { %v593_v1 = vadd.f32 %v592_v4, %v591_v56  ;;  %v588_v44 = vadd.f32 %v587_v17, %v586_v21 }
 0x392   :  { %v598_v58 = vsel %vm583_vm10, %v577_v54, 0.0 }
 0x393   :  { %v553_v62 = vpop.permute.xlu0 %552  ;;  %v599_v8 = vrot.slane %v598_v58, 4  ;;  %v594_v14 = vrot.slane %v593_v1, 2 }
 0x394   :  { %v578_v0 = vmul.f32 %v553_v62, %v148_v55  ;;  %v589_v62 = vrot.slane %v588_v44, 1 }
 0x395   :  { %v600_v2 = vadd.f32 %v599_v8, %v598_v58  ;;  %v595_v36 = vadd.f32 %v594_v14, %v593_v1 }
 0x396   :  { %v605_v9 = vsel %vm583_vm10, %v578_v0, 0.0 }
 0x397   :  { %v606_v13 = vrot.slane %v605_v9, 4  ;;  %v558_v18 = vpop.permute.xlu0 %557  ;;  %v601_v26 = vrot.slane %v600_v2, 2  ;;  %v596_v54 = vrot.slane %v595_v36, 1 }
 0x398   :  { %v579_v19 = vmul.f32 %v558_v18, %v149_v5 }
 0x399   :  { %v607_v3 = vadd.f32 %v606_v13, %v605_v9  ;;  %v602_v42 = vadd.f32 %v601_v26, %v600_v2  ;;  %v597_v8 = vadd.f32 %v596_v54, %v595_v36 }
 0x39a   :  { %v612_v60 = vsel %vm583_vm10, %v579_v19, 0.0  ;;  %v590_v19 = vadd.f32 %v589_v62, %v588_v44  ;;  %v2334_v17 = vpop.eup %1679  ;;  %v645_v44 = vld [vmem:[#allocation5 + $0x50] sm:$0xff] }
 0x39b   :  { %v613_v22 = vrot.slane %v612_v60, 4  ;;  %v563_v12 = vpop.permute.xlu0 %562  ;;  %v608_v29 = vrot.slane %v607_v3, 2  ;;  %v603_v57 = vrot.slane %v602_v42, 1 }
 0x39c   :  { %v580_v23 = vmul.f32 %v563_v12, %v150_v20  ;;  %v1296_v21 = vsel %vm326_vm1, %v597_v8, %v590_v19  ;;  %v1655_v19 = vld [vmem:[#allocation13] sm:$0xff]  }
 0x39d   :  { %v614_v25 = vadd.f32 %v613_v22, %v612_v60  ;;  %v609_v45 = vadd.f32 %v608_v29, %v607_v3  ;;  %v604_v18 = vadd.f32 %v603_v57, %v602_v42 }
 0x39e   :  { %v619_v27 = vsel %vm583_vm10, %v580_v23, 0.0 }
 0x39f   :  { %v620_v31 = vrot.slane %v619_v27, 4  ;;  %v568_v32 = vpop.permute.xlu0 %567  ;;  %v615_v33 = vrot.slane %v614_v25, 2  ;;  %v610_v63 = vrot.slane %v609_v45, 1  ;;  %v1297_v12 = vsel %vm328_vm2, %v604_v18, %v1296_v21 }
 0x3a0   :  { %v581_v34 = vmul.f32 %v568_v32, %v151_v16 }
 0x3a1   :  { %v621_v37 = vadd.f32 %v620_v31, %v619_v27  ;;  %v616_v51 = vadd.f32 %v615_v33, %v614_v25  ;;  %v611_v1 = vadd.f32 %v610_v63, %v609_v45  ;;  %v1309_v31 = vpop.permute.xlu1 %1308 }
 0x3a2   :  { %v626_v43 = vsel %vm583_vm10, %v581_v34, 0.0  ;;  %v1311_v33 = vmul.f32 %v2334_v17, %v1309_v31  ;;  %v684_v34 = vrot.slane %v2300_v24, %v2111_v7  ;;  %v646_v24 = vld [vmem:[#allocation5 + $0x58] sm:$0xff] }
 0x3a3   :  { %v622_v47 = vrot.slane %v621_v37, 2  ;;  %v627_v48 = vrot.slane %v626_v43, 4  ;;  %v573_v49 = vpop.permute.xlu0 %572  ;;  %v617_v5 = vrot.slane %v616_v51, 1  ;;  %v1298_v25 = vsel %vm330_vm3, %v611_v1, %v1297_v12  ;;  %v1656_v1 = vld [vmem:[#allocation13 + $0x8] sm:$0xff]  }
 0x3a4   :  { %v582_v52 = vmul.f32 %v573_v49, %v152_v38  ;;  %v713_v35 = vrot.slane %v684_v34, %v2115_v10  ;;  %v706_v36 = vcombine.high %v684_v34, %v684_v34  ;;  %v691_v49 = vrot.slane %v2310_v28, %v2111_v7 }
 0x3a5   :  { %v623_v55 = vadd.f32 %v622_v47, %v621_v37  ;;  %v628_v56 = vadd.f32 %v627_v48, %v626_v43  ;;  %v618_v60 = vadd.f32 %v617_v5, %v616_v51  ;;  %v643_v37 = vld [vmem:[#allocation5 + $0x40] sm:$0xff]  ;;  %v708_v43 = vcombine.high %v2305_v15, %v2305_v15 }
 0x3a6   :  { %v633_v58 = vsel %vm583_vm10, %v582_v52, 0.0  ;;  %v750_v38 = vmul.f32 %v713_v35, %v643_v37  ;;  %v721_v42 = vrot.slane %v706_v36, %v2115_v10  ;;  %v729_v52 = vrot.slane %v691_v49, %v2115_v10 }
 0x3a7   :  { %v629_v0 = vrot.slane %v628_v56, 2  ;;  %v634_v4 = vrot.slane %v633_v58, 4  ;;  %v624_v9 = vrot.slane %v623_v55, 1  ;;  %v1299_v16 = vsel %vm332_vm4, %v618_v60, %v1298_v25 }
 0x3a8   :  { %v758_v45 = vsel %vm251_vm0, %v750_v38, 0.0  ;;  %v752_v47 = vmul.f32 %v721_v42, %v645_v44  ;;  %v725_v48 = vrot.slane %v708_v43, %v2115_v10  ;;  %v707_v54 = vcombine.high %v691_v49, %v691_v49 }
 0x3a9   :  { %v630_v11 = vadd.f32 %v629_v0, %v628_v56  ;;  %v635_v13 = vadd.f32 %v634_v4, %v633_v58  ;;  %v625_v3 = vadd.f32 %v624_v9, %v623_v55  ;;  %v647_v55 = vld [vmem:[#allocation5 + $0x60] sm:$0xff]  ;;  %v649_v58 = vld [vmem:[#allocation5 + $0x70] sm:$0xff] }
 0x3aa   :  { %v764_v50 = vsel %vm251_vm0, %v752_v47, 0.0  ;;  %v753_v51 = vmul.f32 %v725_v48, %v646_v24  ;;  %v754_v56 = vmul.f32 %v729_v52, %v647_v55  ;;  %v737_v57 = vrot.slane %v707_v54, %v2115_v10  ;;  %v1653_v9 = vld [vmem:[%s2506_s9] sm:$0xff]  }
 0x3ab   :  { %v631_v20 = vrot.slane %v630_v11, 1  ;;  %v636_v2 = vrot.slane %v635_v13, 2  ;;  %v1300_v27 = vsel %vm334_vm5, %v625_v3, %v1299_v16  ;;  %1609 = vmatpush3.bf16.msra.mxu0 %v1653_v9 }
 0x3ac   :  { %v767_v15 = vsel %vm251_vm0, %v753_v51, 0.0  ;;  %v770_v62 = vsel %vm251_vm0, %v754_v56, 0.0  ;;  %v756_v7 = vmul.f32 %v737_v57, %v649_v58  ;;  %1610 = vmatprep.subr.bf16.mxu0 %v1932_v30 }
 0x3ad   :  { %v637_v22 = vadd.f32 %v636_v2, %v635_v13  ;;  %v632_v23 = vadd.f32 %v631_v20, %v630_v11  ;;  %v1654_v11 = vld [vmem:[%s2506_s9 + $0x8] sm:$0xff]   ;;  %v1324_v13 = vld [vmem:[#allocation10 + $0x8] sm:$0xff] }
 0x3ae   :  { %v776_v28 = vsel %vm251_vm0, %v756_v7, 0.0  ;;  %v1330_v18 = vpack.c.bf16 %v1324_v13, %v1324_v13 }
 0x3af   :  { %v638_v14 = vrot.slane %v637_v22, 1  ;;  %v1301_v29 = vsel %vm336_vm6, %v632_v23, %v1300_v27  ;;  %1611 = vmatpush3.bf16.msra.mxu0 %v1654_v11 }
 0x3b0   :  { %1616 = vmatprep.subr.bf16.mxu0 %v1932_v30 }
 0x3b1   :  { %v639_v26 = vadd.f32 %v638_v14, %v637_v22  ;;  %v763_v14 = vpop.xlane.xlu1 %762 }
 0x3b2   :  { %1613 = vmatmul.mubr.msk.bf16.vlgmr.msra.gmra.mrb[4].mxu0 %vm583_vm10, %v1330_v18  ;;  %v783_v16 = vmul.f32 0.125, %v763_v14 }
 0x3b3   :  { %v1302_v32 = vsel %vm338_vm7, %v639_v26, %v1301_v29  ;;  %1617 = vmatpush3.bf16.msra.mxu0 %v1655_v19  ;;  %1620 = vmatprep.mubr.msk.bf16.mxu0 %vm1933_vm9, %v1932_v30 }
 0x3b4   :  { %1303 = vrot.lane.b32.xlu0 %v1302_v32, %s1934_s7  ;;  %1618 = vmatprep.subr.bf16.mxu0 %v1932_v30  ;;  %v805_v27 = vrot.slane %v783_v16, %v2108_v6 }
 0x3b7   :  { %1619 = vmatpush3.bf16.msra.mxu0 %v1656_v1 }
 0x3b8   :  { %1313 = vrot.lane.b32.xlu0 %v1311_v33, %s1934_s7  ;;  %v775_v33 = vpop.xlane.xlu1 %774 }
 0x3b9   :  { %v787_v36 = vmul.f32 0.125, %v775_v33 }
 0x3bb   :  { %v821_v44 = vrot.slane %v787_v36, %v2108_v6 }
 0x3bc   :  { %v781_v43 = vpop.xlane.xlu1 %780 }
 0x3bd   :  { %v789_v47 = vmul.f32 0.125, %v781_v43 }
 0x3bf   :  { %v829_v24 = vrot.slane %v789_v47, %v2108_v6 }
 0x3d7   :  { %759 = vadd.xlane.f32.xlu0 %v758_v45 }
 0x3db   :  { %765 = vadd.xlane.f32.xlu0 %v764_v50 }
 0x3df   :  { %768 = vadd.xlane.f32.xlu0 %v767_v15 }
 0x3e3   :  { %771 = vadd.xlane.f32.xlu0 %v770_v62 }
 0x3e7   :  { %777 = vadd.xlane.f32.xlu0 %v776_v28 }
 0x426   :  { %v1304_v63 = vpop.permute.xlu0 %1303 }
 0x427   :  { %v1306_v0 = vmul.f32 %v2334_v17, %v1304_v63 }
 0x42a   :  { %v1314_v4 = vpop.permute.xlu0 %1313 }
 0x42b   :  { %v2358_v5 = vadd.f32 %v1314_v4, %v1306_v0 }
 0x42d   :  { %1681 = vtanh.f32 %v2358_v5 }
 0x437   :  { %v1682_v8 = vpop.eup %1681 }
 0x438   :  { %1319 = vrot.lane.b32.xlu0 %v1682_v8, %s1924_s3 }
 0x464   :  { %v760_v20 = vpop.xlane.xlu0 %759 }
 0x465   :  { %v782_v25 = vmul.f32 0.125, %v760_v20 }
 0x467   :  { %v801_v30 = vrot.slane %v782_v25, %v2108_v6 }
 0x468   :  { %v766_v2 = vpop.xlane.xlu0 %765 }
 0x469   :  { %v784_v26 = vmul.f32 0.125, %v766_v2  ;;  %v830_v32 = vsel %vm326_vm1, %v805_v27, %v801_v30 }
 0x46b   :  { %v809_v31 = vrot.slane %v784_v26, %v2108_v6 }
 0x46c   :  { %v769_v60 = vpop.xlane.xlu0 %768 }
 0x46d   :  { %v785_v29 = vmul.f32 0.125, %v769_v60  ;;  %v831_v35 = vsel %vm328_vm2, %v809_v31, %v830_v32 }
 0x46f   :  { %v813_v34 = vrot.slane %v785_v29, %v2108_v6 }
 0x470   :  { %v772_v21 = vpop.xlane.xlu0 %771 }
 0x471   :  { %v832_v38 = vsel %vm330_vm3, %v813_v34, %v831_v35 }
 0x474   :  { %v778_v3 = vpop.xlane.xlu0 %777 }
 0x475   :  { %v788_v42 = vmul.f32 0.125, %v778_v3 }
 0x477   :  { %v825_v48 = vrot.slane %v788_v42, %v2108_v6 }
 0x485   :  { %v1384_v55 = vpop.f32.mrb[4].mxu0 }
 0x486   :  { %v1614_v15 = vpop.f32.mrb[5].mxu0 }
 0x487   :  { %v1387_v56 = vpop.f32.mrb[6].mxu0 }
 0x488   :  { %v1615_v57 = vpop.f32.mrb[7].mxu0 }
 0x4aa   :  { %v1320_v22 = vpop.permute.xlu0 %1319 }
 0x4ab   :  { %v2375_v12 = vmul.f32 %v2334_v17, %v1320_v22  ;;  %v786_v17 = vmul.f32 0.125, %v772_v21 }
 0x4ad   :  { %v1325_v23 = vpack.c.bf16 %v2375_v12, %v2375_v12  ;;  %v817_v37 = vrot.slane %v786_v17, %v2108_v6 }
 0x4af   :  { %1391 = vrot.lane.b32.xlu1 %v1325_v23, %s1934_s7  ;;  %v833_v45 = vsel %vm332_vm4, %v817_v37, %v832_v38 }
 0x4b0   :  { %v834_v49 = vsel %vm334_vm5, %v821_v44, %v833_v45 }
 0x4b1   :  { %v835_v50 = vsel %vm336_vm6, %v825_v48, %v834_v49 }
 0x4b2   :  { %v836_v51 = vsel %vm338_vm7, %v829_v24, %v835_v50 }
 0x4b3   :  { %v838_v52 = vsel %vm341_vm8, %v836_v51, -inf }
 0x4d3   :  { %839 = vmax.xlane.f32.xlu1 %v838_v52 }
 0x521   :  { %v1392_v54 = vpop.permute.xlu1 %1391 }
 0x522   :  { %1621 = vmatmul.mubr.msk.bf16.vlgmr.msra.gmra.mrb[8].mxu0 %vm583_vm10, %v1392_v54 }
 0x560   :  { %v840_v58 = vpop.xlane.xlu1 %839 }
 0x561   :  { %v845_v62 = vrot.slane %v840_v58, %v2115_v10  ;;  %v849_v7 = vrot.slane %v840_v58, %v2200_v39  ;;  %v853_v28 = vrot.slane %v840_v58, %v2203_v40  ;;  %v857_v8 = vrot.slane %v840_v58, %v2206_v41 }
 0x562   :  { %v861_v13 = vrot.slane %v840_v58, %v2212_v46  ;;  %v865_v1 = vrot.slane %v840_v58, %v2219_v53  ;;  %v869_v21 = vrot.slane %v840_v58, %v2224_v59  ;;  %v873_v14 = vrot.slane %v840_v58, %v2229_v61 }
 0x563   :  { %v882_v63 = vsub.f32 %v782_v25, %v845_v62  ;;  %v883_v0 = vsub.f32 %v783_v16, %v849_v7  ;;  %v884_v9 = vsub.f32 %v784_v26, %v853_v28  ;;  %v885_v18 = vsub.f32 %v785_v29, %v857_v8 }
 0x564   :  { %v886_v20 = vsub.f32 %v786_v17, %v861_v13  ;;  %v887_v3 = vsub.f32 %v787_v36, %v865_v1  ;;  %v888_v25 = vsub.f32 %v788_v42, %v869_v21  ;;  %v889_v30 = vsub.f32 %v789_v47, %v873_v14 }
 0x565   :  { %v890_v4 = vmul.f32 1.442695, %v882_v63  ;;  %v892_v11 = vmul.f32 1.442695, %v883_v0  ;;  %v894_v19 = vmul.f32 1.442695, %v884_v9 }
 0x566   :  { %v896_v2 = vmul.f32 1.442695, %v885_v18  ;;  %v898_v22 = vmul.f32 1.442695, %v886_v20  ;;  %v900_v16 = vmul.f32 1.442695, %v887_v3 }
 0x567   :  { %1683 = vpow2.f32 %v890_v4  ;;  %v902_v27 = vmul.f32 1.442695, %v888_v25  ;;  %v904_v31 = vmul.f32 1.442695, %v889_v30 }
 0x568   :  { %1685 = vpow2.f32 %v892_v11 }
 0x569   :  { %1687 = vpow2.f32 %v894_v19 }
 0x56a   :  { %1689 = vpow2.f32 %v896_v2 }
 0x56b   :  { %1691 = vpow2.f32 %v898_v22 }
 0x56c   :  { %1693 = vpow2.f32 %v900_v16 }
 0x56d   :  { %1695 = vpow2.f32 %v902_v27 }
 0x56e   :  { %1697 = vpow2.f32 %v904_v31  ;;  %v656_v31 = vld [vmem:[#allocation7 + $0x60] sm:$0xff] }
 0x571   :  { %v2403_v60 = vpop.eup %1683 }
 0x572   :  { %915 = vperm.xlu0 %1644, %v2403_v60   ;;  %v2407_v23 = vpop.eup %1685 }
 0x573   :  { %v1688_v26 = vpop.eup %1687 }
 0x574   :  { %v1690_v29 = vpop.eup %1689 }
 0x575   :  { %v1692_v32 = vpop.eup %1691 }
 0x576   :  { %918 = vperm.xlu0 %1644, %v2407_v23   ;;  %v1694_v17 = vpop.eup %1693 }
 0x577   :  { %v1696_v33 = vpop.eup %1695 }
 0x578   :  { %v1698_v34 = vpop.eup %1697 }
 0x57a   :  { %921 = vperm.xlu0 %1644, %v1688_v26  }
 0x57e   :  { %924 = vperm.xlu0 %1644, %v1690_v29  }
 0x582   :  { %927 = vperm.xlu0 %1644, %v1692_v32  }
 0x586   :  { %930 = vperm.xlu0 %1644, %v1694_v17  }
 0x58a   :  { %933 = vperm.xlu0 %1644, %v1696_v33  }
 0x58e   :  { %936 = vperm.xlu0 %1644, %v1698_v34  }
 0x5f1   :  { %v916_v35 = vpop.permute.xlu0 %915 }
 0x5f2   :  { %v941_v51 = vrot.slane %v916_v35, %v2108_v6  ;;  %v654_v35 = vld [vmem:[#allocation7 + $0x50] sm:$0xff] }
 0x5f5   :  { %v1442_v36 = vpop.f32.mrb[8].mxu0  ;;  %v919_v37 = vpop.permute.xlu0 %918 }
 0x5f6   :  { %v1443_v38 = vadd.f32 %v1442_v36, %v1384_v55  ;;  %v1622_v42 = vpop.f32.mrb[9].mxu0  ;;  %v945_v24 = vrot.slane %v919_v37, %v2108_v6 }
 0x5f7   :  { %v1445_v43 = vpop.f32.mrb[10].mxu0  ;;  %v655_v42 = vld [vmem:[#allocation7 + $0x58] sm:$0xff] }
 0x5f8   :  { %v1623_v44 = vpop.f32.mrb[11].mxu0  ;;  %v970_v55 = vsel %vm326_vm1, %v945_v24, %v941_v51 }
 0x5f9   :  { %v922_v45 = vpop.permute.xlu0 %921 }
 0x5fa   :  { %v949_v50 = vrot.slane %v922_v45, %v2108_v6 }
 0x5fc   :  { %v971_v57 = vsel %vm328_vm2, %v949_v50, %v970_v55 }
 0x5fd   :  { %v925_v47 = vpop.permute.xlu0 %924 }
 0x5fe   :  { %v953_v52 = vrot.slane %v925_v47, %v2108_v6 }
 0x600   :  { %v972_v62 = vsel %vm330_vm3, %v953_v52, %v971_v57  ;;  %v657_v52 = vld [vmem:[#allocation7 + $0x68] sm:$0xff] }
 0x601   :  { %v928_v48 = vpop.permute.xlu0 %927 }
 0x602   :  { %v957_v54 = vrot.slane %v928_v48, %v2108_v6 }
 0x604   :  { %v973_v7 = vsel %vm332_vm4, %v957_v54, %v972_v62 }
 0x605   :  { %v931_v49 = vpop.permute.xlu0 %930 }
 0x606   :  { %v961_v56 = vrot.slane %v931_v49, %v2108_v6 }
 0x608   :  { %v974_v63 = vsel %vm334_vm5, %v961_v56, %v973_v7 }
 0x609   :  { %v934_v15 = vpop.permute.xlu0 %933 }
 0x60a   :  { %v965_v58 = vrot.slane %v934_v15, %v2108_v6 }
 0x60c   :  { %v975_v4 = vsel %vm336_vm6, %v965_v58, %v974_v63  ;;  %v658_v63 = vld [vmem:[#allocation7 + $0x70] sm:$0xff] }
 0x60d   :  { %v937_v28 = vpop.permute.xlu0 %936 }
 0x60e   :  { %v969_v0 = vrot.slane %v937_v28, %v2108_v6 }
 0x610   :  { %v976_v8 = vsel %vm338_vm7, %v969_v0, %v975_v4 }
 0x611   :  { %v978_v9 = vsel %vm341_vm8, %v976_v8, 0.0 }
 0x612   :  { %979 = vadd.xlane.f32.xlu0 %v978_v9 }
 0x69f   :  { %v980_v11 = vpop.xlane.xlu0 %979 }
 0x6a0   :  { %1699 = vrcp.f32 %v980_v11 }
 0x6aa   :  { %v1700_v13 = vpop.eup %1699 }
 0x6ab   :  { %v1002_v18 = vrot.slane %v1700_v13, %v2212_v46  ;;  %v986_v19 = vrot.slane %v1700_v13, %v2115_v10  ;;  %v990_v2 = vrot.slane %v1700_v13, %v2200_v39  ;;  %v994_v21 = vrot.slane %v1700_v13, %v2203_v40  ;;  %v1572_v10 = vld [vmem:[%s2507_s10] ss:$0 sm:$0xff]  ;;  %s1935_s10 = smov 96  }
 0x6ac   :  { %v998_v22 = vrot.slane %v1700_v13, %v2206_v41  ;;  %v1455_v39 = vadd.f32 %v1572_v10, %v1443_v38  ;;  %v1010_v25 = vrot.slane %v1700_v13, %v2224_v59 }
 0x6ad   :  { %v1027_v1 = vmul.f32 %v1692_v32, %v1002_v18  ;;  %v1023_v20 = vmul.f32 %v2403_v60, %v986_v19  ;;  %v1024_v6 = vmul.f32 %v2407_v23, %v990_v2  ;;  %v1025_v3 = vmul.f32 %v1688_v26, %v994_v21  ;;  %v652_v26 = vld [vmem:[#allocation7 + $0x40] sm:$0xff] }
 0x6ae   :  { %v1026_v46 = vmul.f32 %v1690_v29, %v998_v22  ;;  %v1006_v60 = vrot.slane %v1700_v13, %v2219_v53  ;;  %1701 = vtanh.f32 %v1455_v39  ;;  %v1029_v40 = vmul.f32 %v1696_v33, %v1010_v25  ;;  %v653_v53 = vld [vmem:[#allocation7 + $0x48] sm:$0xff] }
 0x6af   :  { %1053 = vperm.xlu0 %1644, %v1027_v1   ;;  %1033 = vperm.xlu1 %1643, %v1023_v20   ;;  %v1014_v23 = vrot.slane %v1700_v13, %v2229_v61  ;;  %v1573_v43 = vmul.f32 -1.442695, %v1455_v39 }
 0x6b0   :  { %v1028_v14 = vmul.f32 %v1694_v17, %v1006_v60 }
 0x6b1   :  { %v1030_v41 = vmul.f32 %v1698_v34, %v1014_v23  ;;  %1703 = vpow2.f32 %v1573_v43 }
 0x6b3   :  { %1038 = vperm.xlu1 %1643, %v1024_v6   ;;  %v659_v6 = vld [vmem:[#allocation7 + $0x78] sm:$0xff] }
 0x6b7   :  { %1043 = vperm.xlu1 %1643, %v1025_v3  }
 0x6b8   :  { %v1702_v16 = vpop.eup %1701 }
 0x6bb   :  { %1048 = vperm.xlu1 %1643, %v1026_v46   ;;  %v1704_v39 = vpop.eup %1703 }
 0x6bf   :  { %1058 = vperm.xlu1 %1643, %v1028_v14  }
 0x6c3   :  { %1063 = vperm.xlu1 %1643, %v1029_v40  }
 0x6c7   :  { %1068 = vperm.xlu1 %1643, %v1030_v41  }
 0x6cb   :  { %1483 = vrot.lane.b32.xlu1 %v1702_v16, %s1924_s3 }
 0x72e   :  { %v1034_v30 = vpop.permute.xlu1 %1033  ;;  %v1054_v32 = vpop.permute.xlu0 %1053 }
 0x72f   :  { %v1071_v27 = vmul.f32 %v1034_v30, %v652_v26  ;;  %v1075_v61 = vmul.f32 %v1054_v32, %v656_v31 }
 0x731   :  { %v1079_v59 = vsel %vm583_vm10, %v1071_v27, 0.0  ;;  %v1107_v45 = vsel %vm583_vm10, %v1075_v61, 0.0  ;;  %v1459_v27 = vadd.f32 1.0, %v1704_v39 }
 0x732   :  { %v1039_v29 = vpop.permute.xlu1 %1038  ;;  %v1080_v37 = vrot.slane %v1079_v59, 4  ;;  %v1108_v54 = vrot.slane %v1107_v45, 4 }
 0x733   :  { %v1072_v17 = vmul.f32 %v1039_v29, %v653_v53  ;;  %1705 = vrcp.f32 %v1459_v27 }
 0x734   :  { %v1081_v24 = vadd.f32 %v1080_v37, %v1079_v59  ;;  %v1109_v0 = vadd.f32 %v1108_v54, %v1107_v45 }
 0x735   :  { %v1086_v33 = vsel %vm583_vm10, %v1072_v17, 0.0 }
 0x736   :  { %v1087_v36 = vrot.slane %v1086_v33, 4  ;;  %v1044_v34 = vpop.permute.xlu1 %1043  ;;  %v1082_v58 = vrot.slane %v1081_v24, 2  ;;  %v1110_v21 = vrot.slane %v1109_v0, 2 }
 0x737   :  { %v1073_v38 = vmul.f32 %v1044_v34, %v654_v35 }
 0x738   :  { %v1088_v47 = vadd.f32 %v1087_v36, %v1086_v33  ;;  %v1083_v18 = vadd.f32 %v1082_v58, %v1081_v24  ;;  %v1111_v26 = vadd.f32 %v1110_v21, %v1109_v0 }
 0x739   :  { %v1093_v44 = vsel %vm583_vm10, %v1073_v38, 0.0 }
 0x73a   :  { %v1094_v48 = vrot.slane %v1093_v44, 4  ;;  %v1049_v49 = vpop.permute.xlu1 %1048  ;;  %v1089_v55 = vrot.slane %v1088_v47, 2  ;;  %v1084_v14 = vrot.slane %v1083_v18, 1  ;;  %v1112_v36 = vrot.slane %v1111_v26, 1 }
 0x73b   :  { %v1074_v50 = vmul.f32 %v1049_v49, %v655_v42 }
 0x73c   :  { %v1095_v51 = vadd.f32 %v1094_v48, %v1093_v44  ;;  %v1090_v8 = vadd.f32 %v1089_v55, %v1088_v47  ;;  %v1085_v32 = vadd.f32 %v1084_v14, %v1083_v18  ;;  %v1113_v47 = vadd.f32 %v1112_v36, %v1111_v26 }
 0x73d   :  { %v1100_v15 = vsel %vm583_vm10, %v1074_v50, 0.0  ;;  %v1706_v55 = vpop.eup %1705 }
 0x73e   :  { %v1101_v56 = vrot.slane %v1100_v15, 4  ;;  %v1059_v57 = vpop.permute.xlu1 %1058  ;;  %v1096_v62 = vrot.slane %v1095_v51, 2  ;;  %v1091_v22 = vrot.slane %v1090_v8, 1 }
 0x73f   :  { %v1076_v7 = vmul.f32 %v1059_v57, %v657_v52 }
 0x740   :  { %v1102_v28 = vadd.f32 %v1101_v56, %v1100_v15  ;;  %v1097_v19 = vadd.f32 %v1096_v62, %v1095_v51  ;;  %v1092_v53 = vadd.f32 %v1091_v22, %v1090_v8 }
 0x741   :  { %v1114_v4 = vsel %vm583_vm10, %v1076_v7, 0.0 }
 0x742   :  { %v1103_v9 = vrot.slane %v1102_v28, 2  ;;  %v1115_v11 = vrot.slane %v1114_v4, 4  ;;  %v1064_v13 = vpop.permute.xlu1 %1063  ;;  %v1098_v25 = vrot.slane %v1097_v19, 1  ;;  %v1471_v34 = vsel %vm326_vm1, %v1092_v53, %v1085_v32 }
 0x743   :  { %v1077_v1 = vmul.f32 %v1064_v13, %v658_v63 }
 0x744   :  { %v1104_v20 = vadd.f32 %v1103_v9, %v1102_v28  ;;  %v1116_v2 = vadd.f32 %v1115_v11, %v1114_v4  ;;  %v1099_v17 = vadd.f32 %v1098_v25, %v1097_v19 }
 0x745   :  { %v1121_v3 = vsel %vm583_vm10, %v1077_v1, 0.0 }
 0x746   :  { %v1117_v10 = vrot.slane %v1116_v2, 2  ;;  %v1122_v46 = vrot.slane %v1121_v3, 4  ;;  %v1069_v60 = vpop.permute.xlu1 %1068  ;;  %v1105_v23 = vrot.slane %v1104_v20, 1  ;;  %v1472_v42 = vsel %vm328_vm2, %v1099_v17, %v1471_v34 }
 0x747   :  { %v1078_v40 = vmul.f32 %v1069_v60, %v659_v6 }
 0x748   :  { %v1118_v41 = vadd.f32 %v1117_v10, %v1116_v2  ;;  %v1123_v16 = vadd.f32 %v1122_v46, %v1121_v3  ;;  %v1106_v59 = vadd.f32 %v1105_v23, %v1104_v20 }
 0x749   :  { %v1128_v30 = vsel %vm583_vm10, %v1078_v40, 0.0 }
 0x74a   :  { %v1124_v29 = vrot.slane %v1123_v16, 2  ;;  %v1129_v31 = vrot.slane %v1128_v30, 4  ;;  %v1119_v35 = vrot.slane %v1118_v41, 1  ;;  %v1473_v45 = vsel %vm330_vm3, %v1106_v59, %v1472_v42  ;;  %v1484_v54 = vpop.permute.xlu1 %1483 }
 0x74b   :  { %v1474_v24 = vsel %vm332_vm4, %v1113_v47, %v1473_v45  ;;  %v1486_v56 = vmul.f32 %v1706_v55, %v1484_v54 }
 0x74c   :  { %v1125_v33 = vadd.f32 %v1124_v29, %v1123_v16  ;;  %v1130_v61 = vadd.f32 %v1129_v31, %v1128_v30  ;;  %v1120_v43 = vadd.f32 %v1119_v35, %v1118_v41 }
 0x74e   :  { %v1126_v37 = vrot.slane %v1125_v33, 1  ;;  %v1131_v38 = vrot.slane %v1130_v61, 2  ;;  %v1475_v51 = vsel %vm334_vm5, %v1120_v43, %v1474_v24 }
 0x750   :  { %v1132_v44 = vadd.f32 %v1131_v38, %v1130_v61  ;;  %v1127_v48 = vadd.f32 %v1126_v37, %v1125_v33 }
 0x752   :  { %v1133_v49 = vrot.slane %v1132_v44, 1  ;;  %v1476_v52 = vsel %vm336_vm6, %v1127_v48, %v1475_v51 }
 0x754   :  { %v1134_v50 = vadd.f32 %v1133_v49, %v1132_v44 }
 0x756   :  { %v1477_v15 = vsel %vm338_vm7, %v1134_v50, %v1476_v52 }
 0x757   :  { %1478 = vrot.lane.b32.xlu1 %v1477_v15, %s1934_s7 }
 0x75b   :  { %1488 = vrot.lane.b32.xlu1 %v1486_v56, %s1934_s7 }
 0x75f   :  { %1499 = vrot.lane.b32.xlu1 %v2375_v12, %s1934_s7 }
 0x763   :  { %1510 = vrot.lane.b32.xlu1 %v2358_v5, %s1935_s10 }
 0x7c9   :  { %v1479_v57 = vpop.permute.xlu1 %1478 }
 0x7ca   :  { %v1481_v58 = vmul.f32 %v1706_v55, %v1479_v57 }
 0x7cd   :  { %v1489_v62 = vpop.permute.xlu1 %1488 }
 0x7ce   :  { %v1491_v7 = vadd.f32 %v1489_v62, %v1481_v58 }
 0x7d0   :  { %1707 = vtanh.f32 %v1491_v7 }
 0x7d1   :  { %v1500_v28 = vpop.permute.xlu1 %1499 }
 0x7d2   :  { %1502 = vst.msk [vmem:[#allocation14] sm:$0xff] %vm583_vm10, %v1500_v28 }
 0x7d5   :  { %v1511_v63 = vpop.permute.xlu1 %1510 }
 0x7d6   :  { %1513 = vst.msk [vmem:[#allocation15] sm:$0xff] %vm583_vm10, %v1511_v63 }
 0x7da   :  { %v1708_v0 = vpop.eup %1707 }
 0x7db   :  { %1494 = vrot.lane.b32.xlu0 %v1708_v0, %s1924_s3 }
 0x84d   :  { %v1495_v4 = vpop.permute.xlu0 %1494 }
 0x84e   :  { %v1497_v8 = vmul.f32 %v1706_v55, %v1495_v4 }
 0x850   :  { %1504 = vrot.lane.b32.xlu0 %v1497_v8, %s1934_s7 }
 0x854   :  { %1515 = vrot.lane.b32.xlu0 %v1491_v7, %s1935_s10 }
 0x8c2   :  { %v1505_v5 = vpop.permute.xlu0 %1504 }
 0x8c3   :  { %1508 = vst.msk [vmem:[#allocation14 + $0x8] sm:$0xff] %vm583_vm10, %v1505_v5 }
 0x8c4   :  { %1874 = shalt.err (!%p1871_p4)
}
 0x8c5   :  { %s1875_s28 = scalar_lea.hbm %s2508_s11, 256 }
 0x8c6   :  { %p1876_p5 = scmp.ne.s32.totalorder %s2508_s11, %s1875_s28  ;;  %p1879_p6 = scmp.lt.u32.totalorder %s1875_s28, %s2508_s11 }
 0x8c8   :  { %p1881_p7 = pnand %p1879_p6, %p1876_p5 }
 0x8ca   :  { %1884 = shalt.err (!%p1881_p7)
}
 0x8cb   :  { %1531 = dma.vmem_to_hbm [thread:$0]  %s1526_s1, 256, %s2508_s11, [#allocation4], %s1921_s15, %s1921_s15, %s1922_s16   ;;  %v1516_v12 = vpop.permute.xlu0 %1515 }
 0x8cc   :  { %1519 = vst.msk [vmem:[#allocation15 + $0x8] sm:$0xff] %vm583_vm10, %v1516_v12  ;;  %s1885_s24 = scalar_lea.vmem %s1538_s13, 256  ;;  %p1890_p9 = scmp.lt.s32.totalorder %s1538_s13, %s1538_s13 }
 0x8cd   :  { %p1886_p8 = scmp.ne.s32.totalorder %s1538_s13, %s1885_s24  ;;  %p1891_p10 = scmp.lt.s32.totalorder %s1885_s24, %s1885_s24 }
 0x8cf   :  { %p1892_p11 = por %p1891_p10, %p1890_p9 }
 0x8d1   :  { %p1893_p12 = pnand %p1892_p11, %p1886_p8 }
 0x8d3   :  { %1896 = shalt.err (!%p1893_p12)
}
 0x8d4   :  { %s1897_s6 = scalar_lea.hbm %s2509_s12, 256 }
 0x8d5   :  { %p1898_p13 = scmp.ne.s32.totalorder %s2509_s12, %s1897_s6  ;;  %p1901_p0 = scmp.lt.u32.totalorder %s1897_s6, %s2509_s12 }
 0x8d7   :  { %p1903_p1 = pnand %p1901_p0, %p1898_p13 }
 0x8d9   :  { %1906 = shalt.err (!%p1903_p1)
}
 0x8da   :  { %1543 = dma.vmem_to_hbm [thread:$0]  %s1538_s13, 256, %s2509_s12, [#allocation16], %s1921_s15, %s1921_s15, %s1922_s16  }
 0x8db   :  { %1915 = dma.done.wait [#allocation4], 256  }
 0x8dc   :  { %1916 = vsyncadd [#allocation4], 4294967040 }
 0x8dd   :  { %1917 = dma.done.wait [#allocation16], 256  }
 0x8de   :  { %1918 = vsyncadd [#allocation16], 4294967040 }
 0x8df   :  { %1550 = vsyncpa [#allocation3], 1 }
 0x8e0   :  { %1551 = vsyncpa [#allocation6], 1 }
 0x8e1   :  { %1552 = vsyncpa [#allocation9], 1 }
 0x8e2   :  { %1553 = vsyncpa [#allocation12], 1 }
 0x8e3   :  { %1554 = vsyncpa [#allocation4], 1 }
 0x8e4   :  { %1555 = vsyncpa [#allocation16], 1 }

</bundles_post_ra>
